<compile_context>
chip_gen: v7x
topology: tpu7x:2x2x1
jax: 0.10.0
libtpu: 0.0.40
codegen_flags: <defaults>
</compile_context>

<pallas_src>
import jax
import jax.numpy as jnp
from jax import lax
from jax.experimental import pallas as pl
from jax.experimental.pallas import tpu as pltpu

MID = 256    # hidden channels of the cbr block (fixed by the module)
EPS = 1e-5   # BatchNorm2d default eps
LANE = 128
SUB = 8
C_BLK = 8    # classes per upsample grid step (sized for v7x VMEM)


def _round_up(x, m):
    return (x + m - 1) // m * m


# ----------------------- optional single-buffered constants ------------------

_BUF1_UNSET = object()
_BUF1 = _BUF1_UNSET


def _buffered_one():
    """pl.Buffered(1) if this Pallas build supports single-buffering constant
    blocks inside pallas_call (frees one weight-sized buffer of VMEM); else None."""
    global _BUF1
    if _BUF1 is _BUF1_UNSET:
        try:
            def probe(c_ref, x_ref, o_ref):
                o_ref[...] = x_ref[...] + c_ref[...]

            f = pl.pallas_call(
                probe,
                out_shape=jax.ShapeDtypeStruct((16, 128), jnp.float32),
                grid=(2,),
                in_specs=[pl.BlockSpec((8, 128), lambda i: (0, 0),
                                       pipeline_mode=pl.Buffered(1)),
                          pl.BlockSpec((8, 128), lambda i: (i, 0))],
                out_specs=pl.BlockSpec((8, 128), lambda i: (i, 0)))
            jax.block_until_ready(f(jnp.ones((8, 128), jnp.float32),
                                    jnp.ones((16, 128), jnp.float32)))
            _BUF1 = pl.Buffered(1)
        except Exception:          # fall back to default double buffering
            _BUF1 = None
    return _BUF1


def _const_spec(shape, buf1):
    """BlockSpec for a grid-invariant (constant) operand."""
    zeros = (0,) * len(shape)
    imap = lambda *_: zeros
    if buf1 is not None:
        return pl.BlockSpec(shape, imap, pipeline_mode=buf1)
    return pl.BlockSpec(shape, imap)


# ----------------------------- kernels ---------------------------------------


def _head_kernel(x_ref, halo_ref, w_ref, scale_ref, shift_ref,
                 wcls_ref, bcls_ref, out_ref, acc_ref):
    # x_ref:    (1, TH, Wc+2, Cin) bf16 -- row tile of the zero-padded NHWC input
    # halo_ref: (1, 2,  Wc+2, Cin) bf16 -- the two padded rows just below the tile
    # w_ref:    (3, 3*Cin, 256)    bf16 -- conv weights, per-ky im2col ((kx,cin),out)
    # scale/shift: (1, 256) f32          -- folded BatchNorm (inference)
    # wcls_ref: (256, NCP) bf16, bcls_ref: (1, NCP) f32 -- lane-padded classifier
    # out_ref:  (1, TH, Wc, NCP) f32    -- lane-dense logit tile
    # acc_ref:  (TH*Wc, 256)     f32    -- VMEM accumulator scratch
    _, TH, Wpc, Cin = x_ref.shape
    Wc = Wpc - 2

    xt = jnp.concatenate([x_ref[0], halo_ref[0]], axis=0)        # (TH+2, Wc+2, Cin)

    # Per-ky im2col accumulation: 3 matmuls with K = 3*Cin into a VMEM scratch.
    # Avoids materializing the full 9*Cin patch and keeps the f32 accumulator
    # out of the vreg file.
    for ky in range(3):
        taps = [xt[ky:ky + TH, kx:kx + Wc, :] for kx in range(3)]
        patch = jnp.concatenate(taps, axis=-1).reshape(TH * Wc, 3 * Cin)   # bf16
        contrib = jnp.dot(patch, w_ref[ky], preferred_element_type=jnp.float32)
        if ky == 0:
            acc_ref[...] = contrib
        else:
            acc_ref[...] += contrib

    # BatchNorm (inference, folded) + ReLU in f32 (v5e has no bf16 VPU).
    y = jnp.maximum(acc_ref[...] * scale_ref[...] + shift_ref[...], 0.0)

    # TODO(synk): Dropout2d(p=0.1) only acts in training mode; eval-mode identity here.

    # 1x1 classification conv (lane-padded output -> unmasked stores) + bias.
    logits = jnp.dot(y.astype(jnp.bfloat16), wcls_ref[...],
                     preferred_element_type=jnp.float32) + bcls_ref[...]
    out_ref[0] = logits.reshape(TH, Wc, -1).astype(out_ref.dtype)


def _upsample_kernel(lg_ref, uh_ref, uwT_ref, out_ref):
    # lg_ref:  (1, C_BLK, H, W)          bf16 -- block of logit planes
    # uh_ref:  (height, H)               bf16 -- bilinear rows matrix
    # uwT_ref: (W, width)                bf16 -- bilinear cols matrix, transposed
    # out_ref: (1, C_BLK, height, width) f32  -- lane-dense NCHW output block
    cblk = lg_ref.shape[1]
    for c in range(cblk):   # static unroll; per-plane 2-D matmuls (no relayouts)
        t = jnp.dot(lg_ref[0, c], uwT_ref[...],
                    preferred_element_type=jnp.float32)              # (H, width)
        out_ref[0, c] = jnp.dot(uh_ref[...], t.astype(jnp.bfloat16),
                                preferred_element_type=jnp.float32
                                ).astype(out_ref.dtype)              # (height, width)


# ----------------------------- helpers ----------------------------------------


def interp_matrix(out_size, in_size, dtype=jnp.float32):
    """Row-stochastic bilinear interpolation matrix, align_corners=True."""
    if out_size == 1 or in_size == 1:
        m = jnp.zeros((out_size, in_size), dtype)
        return m.at[:, 0].set(1.0)
    coords = jnp.arange(out_size, dtype=jnp.float32) * (in_size - 1) / (out_size - 1)
    lo = jnp.clip(jnp.floor(coords).astype(jnp.int32), 0, in_size - 2)
    frac = coords - lo.astype(jnp.float32)
    eye = jnp.eye(in_size, dtype=dtype)
    return (1.0 - frac)[:, None] * eye[lo] + frac[:, None] * eye[lo + 1]


def _pick_row_tile(H, Wc, Cin, ncp):
    """Largest even row tile whose per-step VMEM footprint fits ~24 MiB
    (double-buffered inputs + scratch + live patch + output block): v7x-safe,
    and big enough to amortize per-step overhead on v5e/v6e."""
    budget = 24 * 1024 * 1024
    cap = max(8, min(64, 1 << max(H - 1, 1).bit_length()))
    for th in (64, 32, 16, 8, 4, 2):
        if th > cap:
            continue
        in_b = 2 * (th + 2) * (Wc + 2) * Cin * 2     # double-buffered bf16 tile+halo
        acc_b = th * Wc * MID * 4                    # f32 accumulator scratch
        patch_b = th * Wc * 3 * Cin * 2              # live per-ky bf16 patch
        out_b = 2 * th * Wc * ncp * 4                # double-buffered f32 out block
        if in_b + acc_b + patch_b + out_b <= budget:
            return th
    return 2


def init_params(key, in_channels, n_classes):
    k1, k2, k3, k4, k5 = jax.random.split(key, 5)
    return {
        # conv weight in HWIO layout (torch OIHW transposed)
        "wconv": 0.1 * jax.random.normal(k1, (3, 3, in_channels, MID), jnp.float32),
        "gamma": 1.0 + 0.1 * jax.random.normal(k2, (MID,), jnp.float32),
        "beta": 0.1 * jax.random.normal(k3, (MID,), jnp.float32),
        "mean": jnp.zeros((MID,), jnp.float32),   # BN running stats (defaults)
        "var": jnp.ones((MID,), jnp.float32),
        "wcls": 0.05 * jax.random.normal(k4, (MID, n_classes), jnp.float32),
        "bcls": 0.01 * jax.random.normal(k5, (n_classes,), jnp.float32),
    }


# ----------------------------- forward -----------------------------------------


def auxiliary_psp_forward(x_nchw, params, height, width):
    N, Cin, H, W = x_nchw.shape
    n_classes = params["wcls"].shape[1]

    ncp = _round_up(n_classes, LANE)      # lane-dense classifier width
    Wc = _round_up(W, SUB)                # sublane-aligned compute width
    TH = _pick_row_tile(H, Wc, Cin, ncp)  # even row tile
    Hc = _round_up(H, TH)
    n_tiles = Hc // TH
    Wpc = Wc + 2

    # Glue: NHWC + bf16 + zero padding (1-px conv halo plus alignment padding
    # on the bottom/right that is sliced away after kernel 1).
    x = jnp.transpose(x_nchw, (0, 2, 3, 1)).astype(jnp.bfloat16)
    xp = jnp.pad(x, ((0, 0), (1, 1 + Hc - H), (1, 1 + Wc - W), (0, 0)))

    scale = (params["gamma"] / jnp.sqrt(params["var"] + EPS)).astype(jnp.float32)
    shift = (params["beta"] - params["mean"] * scale).astype(jnp.float32)
    w3 = params["wconv"].astype(jnp.bfloat16).reshape(3, 3 * Cin, MID)
    wcls = jnp.zeros((MID, ncp), jnp.bfloat16).at[:, :n_classes].set(
        params["wcls"].astype(jnp.bfloat16))
    bcls = jnp.zeros((1, ncp), jnp.float32).at[0, :n_classes].set(
        params["bcls"].astype(jnp.float32))

    buf1 = _buffered_one()

    flops1 = 2 * N * Hc * Wc * (9 * Cin * MID + MID * ncp)
    bytes1 = (xp.size * 2 + (w3.size + wcls.size) * 2
              + (scale.size + shift.size + bcls.size) * 4
              + N * Hc * Wc * ncp * 4)
    cost1 = pl.CostEstimate(flops=int(flops1), transcendentals=0,
                            bytes_accessed=int(bytes1))

    # --- kernel 1: conv3x3 + BN + ReLU + 1x1 conv, row-tiled ---------------------
    logits = pl.pallas_call(
        _head_kernel,
        out_shape=jax.ShapeDtypeStruct((N, Hc, Wc, ncp), jnp.float32),
        grid_spec=pltpu.PrefetchScalarGridSpec(
            num_scalar_prefetch=0,
            grid=(N, n_tiles),
            in_specs=[
                pl.BlockSpec((1, TH, Wpc, Cin), lambda n, i: (n, i, 0, 0)),
                # 2-row bottom halo read straight from xp (no wrapper gather);
                # TH is even so the halo start (i+1)*TH is a multiple of 2.
                pl.BlockSpec((1, 2, Wpc, Cin),
                             lambda n, i: (n, (i + 1) * (TH // 2), 0, 0)),
                _const_spec((3, 3 * Cin, MID), buf1),
                _const_spec((1, MID), buf1),
                _const_spec((1, MID), buf1),
                _const_spec((MID, ncp), buf1),
                _const_spec((1, ncp), buf1),
            ],
            out_specs=pl.BlockSpec((1, TH, Wc, ncp), lambda n, i: (n, i, 0, 0)),
            scratch_shapes=[pltpu.VMEM((TH * Wc, MID), jnp.float32)],
        ),
        compiler_params=pltpu.CompilerParams(
            dimension_semantics=("parallel", "parallel"),
            vmem_limit_bytes=48 * 1024 * 1024),
        cost_estimate=cost1,
    )(xp, xp, w3, scale.reshape(1, MID), shift.reshape(1, MID), wcls, bcls)

    # small intermediate: slice off alignment/lane padding, go class-major, bf16
    lg = logits[:, :H, :W, :n_classes]
    lg = jnp.transpose(lg, (0, 3, 1, 2)).astype(jnp.bfloat16)     # (N, nc, H, W)
    ncp2 = _round_up(n_classes, C_BLK)
    if ncp2 != n_classes:
        lg = jnp.pad(lg, ((0, 0), (0, ncp2 - n_classes), (0, 0), (0, 0)))

    uh = interp_matrix(height, H).astype(jnp.bfloat16)            # (height, H)
    uwT = interp_matrix(width, W).T.astype(jnp.bfloat16)          # (W, width)

    flops2 = 2 * N * ncp2 * (H * W * width + height * H * width)
    bytes2 = lg.size * 2 + (uh.size + uwT.size) * 2 + N * ncp2 * height * width * 4
    cost2 = pl.CostEstimate(flops=int(flops2), transcendentals=0,
                            bytes_accessed=int(bytes2))

    # --- kernel 2: bilinear upsample, class-blocked, lane-dense NCHW output ------
    out = pl.pallas_call(
        _upsample_kernel,
        out_shape=jax.ShapeDtypeStruct((N, ncp2, height, width), jnp.float32),
        grid_spec=pltpu.PrefetchScalarGridSpec(
            num_scalar_prefetch=0,
            grid=(N, ncp2 // C_BLK),
            in_specs=[
                pl.BlockSpec((1, C_BLK, H, W), lambda n, c: (n, c, 0, 0)),
                _const_spec((height, H), buf1),
                _const_spec((W, width), buf1),
            ],
            out_specs=pl.BlockSpec((1, C_BLK, height, width),
                                   lambda n, c: (n, c, 0, 0)),
        ),
        compiler_params=pltpu.CompilerParams(
            dimension_semantics=("parallel", "parallel"),
            vmem_limit_bytes=32 * 1024 * 1024),
        cost_estimate=cost2,
    )(lg, uh, uwT)

    return out[:, :n_classes]   # NCHW


# ----------------------------- reference ---------------------------------------


def reference_forward(x_nchw, params, height, width):
    """Plain-JAX reference (same math incl. the kernel's bf16 rounding points)."""
    hp = lax.Precision.HIGHEST
    x = jnp.transpose(x_nchw, (0, 2, 3, 1)).astype(jnp.bfloat16).astype(jnp.float32)
    wconv = params["wconv"].astype(jnp.bfloat16).astype(jnp.float32)
    conv = lax.conv_general_dilated(
        x, wconv, window_strides=(1, 1), padding=((1, 1), (1, 1)),
        dimension_numbers=("NHWC", "HWIO", "NHWC"), precision=hp)
    scale = params["gamma"] / jnp.sqrt(params["var"] + EPS)
    shift = params["beta"] - params["mean"] * scale
    y = jnp.maximum(conv * scale + shift, 0.0)
    y = y.astype(jnp.bfloat16).astype(jnp.float32)
    wcls = params["wcls"].astype(jnp.bfloat16).astype(jnp.float32)
    logits = jnp.einsum("nhwc,cd->nhwd", y, wcls, precision=hp) + params["bcls"]
    # bilinear upsample: cols first, then rows, with the kernel's bf16 roundings
    H, W = x.shape[1], x.shape[2]
    lg16 = logits.astype(jnp.bfloat16).astype(jnp.float32)
    uh = interp_matrix(height, H).astype(jnp.bfloat16).astype(jnp.float32)
    uw = interp_matrix(width, W).astype(jnp.bfloat16).astype(jnp.float32)
    t = jnp.einsum("Ww,nhwd->nhWd", uw, lg16, precision=hp)
    t = t.astype(jnp.bfloat16).astype(jnp.float32)
    out = jnp.einsum("Hh,nhWd->nHWd", uh, t, precision=hp)
    return jnp.transpose(out, (0, 3, 1, 2))


if __name__ == "__main__":
    # small shapes consistent with the module: NCHW input, upsample to (height, width)
    N, Cin, H, W = 2, 4, 16, 16
    n_classes = 8
    height, width = 32, 32

    key = jax.random.PRNGKey(0)
    kx, kp = jax.random.split(key)
    x = jax.random.normal(kx, (N, Cin, H, W), jnp.float32)
    params = init_params(kp, Cin, n_classes)

    out = auxiliary_psp_forward(x, params, height, width)
    out = jax.block_until_ready(out)

    ref = jax.block_until_ready(reference_forward(x, params, height, width))
    assert out.shape == (N, n_classes, height, width)
    assert jnp.allclose(out, ref, rtol=2e-2, atol=2e-2), float(
        jnp.max(jnp.abs(out - ref)))

    print("KERNEL_OK")
</pallas_src>

<mosaic_0001>
module attributes {stable_mosaic.version = 11 : i64} {
  func.func @probe(%arg0: i32, %arg1: memref<8x128xf32, #tpu.memory_space<vmem>>, %arg2: memref<8x128xf32, #tpu.memory_space<vmem>>, %arg3: memref<8x128xf32, #tpu.memory_space<vmem>>) attributes {dimension_semantics = [#tpu.dimension_semantics<arbitrary>], iteration_bounds = array<i64: 2>, scalar_prefetch = 0 : i64, scratch_operands = 0 : i64, tpu.core_type = #tpu.core_type<tc>, window_params = [{pipeline_mode = #tpu.pipeline_mode<synchronous>, transform_indices = @transform_0, window_bounds = array<i64: 8, 128>}, {transform_indices = @transform_1, window_bounds = array<i64: 8, 128>}, {transform_indices = @transform_2, window_bounds = array<i64: 8, 128>}]} {
    %c0 = arith.constant 0 : index
    %c0_0 = arith.constant 0 : index
    %0 = vector.load %arg2[%c0, %c0_0] : memref<8x128xf32, #tpu.memory_space<vmem>>, vector<8x128xf32>
    %c0_1 = arith.constant 0 : index
    %c0_2 = arith.constant 0 : index
    %1 = vector.load %arg1[%c0_1, %c0_2] : memref<8x128xf32, #tpu.memory_space<vmem>>, vector<8x128xf32>
    %2 = arith.addf %0, %1 : vector<8x128xf32>
    %c0_3 = arith.constant 0 : index
    %c0_4 = arith.constant 0 : index
    %3 = vector.load %arg3[%c0_3, %c0_4] : memref<8x128xf32, #tpu.memory_space<vmem>>, vector<8x128xf32>
    tpu.vector_store %arg3[%c0_3, %c0_4], %2 {strides = array<i32>} : memref<8x128xf32, #tpu.memory_space<vmem>>, vector<8x128xf32>,
    return
  }
  func.func @transform_0(%arg0: i32) -> (i32, i32) {
    %c0_i32 = arith.constant 0 : i32
    %c0_i32_0 = arith.constant 0 : i32
    %c0_i32_1 = arith.constant 0 : i32
    return %c0_i32, %c0_i32_0 : i32, i32
  }
  func.func @transform_1(%arg0: i32) -> (i32, i32) {
    %c0_i32 = arith.constant 0 : i32
    %c0_i32_0 = arith.constant 0 : i32
    return %arg0, %c0_i32 : i32, i32
  }
  func.func @transform_2(%arg0: i32) -> (i32, i32) {
    %c0_i32 = arith.constant 0 : i32
    %c0_i32_0 = arith.constant 0 : i32
    return %arg0, %c0_i32 : i32, i32
  }
}

module attributes {stable_mosaic.version = 11 : i64} {
  func.func @_head_kernel(%arg0: i32, %arg1: i32, %arg2: memref<1x16x18x4xbf16, #tpu.memory_space<vmem>>, %arg3: memref<1x2x18x4xbf16, #tpu.memory_space<vmem>>, %arg4: memref<3x12x256xbf16, #tpu.memory_space<vmem>>, %arg5: memref<1x256xf32, #tpu.memory_space<vmem>>, %arg6: memref<1x256xf32, #tpu.memory_space<vmem>>, %arg7: memref<256x128xbf16, #tpu.memory_space<vmem>>, %arg8: memref<1x128xf32, #tpu.memory_space<vmem>>, %arg9: memref<1x16x16x128xf32, #tpu.memory_space<vmem>>, %arg10: memref<256x256xf32, #tpu.memory_space<vmem>>) attributes {dimension_semantics = [#tpu.dimension_semantics<parallel>, #tpu.dimension_semantics<parallel>], iteration_bounds = array<i64: 2, 1>, scalar_prefetch = 0 : i64, scratch_operands = 1 : i64, tpu.core_type = #tpu.core_type<tc>, window_params = [{transform_indices = @transform_0, window_bounds = array<i64: 1, 16, 18, 4>}, {transform_indices = @transform_1, window_bounds = array<i64: 1, 2, 18, 4>}, {pipeline_mode = #tpu.pipeline_mode<synchronous>, transform_indices = @transform_2, window_bounds = array<i64: 3, 12, 256>}, {pipeline_mode = #tpu.pipeline_mode<synchronous>, transform_indices = @transform_3, window_bounds = array<i64: 1, 256>}, {pipeline_mode = #tpu.pipeline_mode<synchronous>, transform_indices = @transform_4, window_bounds = array<i64: 1, 256>}, {pipeline_mode = #tpu.pipeline_mode<synchronous>, transform_indices = @transform_5, window_bounds = array<i64: 256, 128>}, {pipeline_mode = #tpu.pipeline_mode<synchronous>, transform_indices = @transform_6, window_bounds = array<i64: 1, 128>}, {transform_indices = @transform_7, window_bounds = array<i64: 1, 16, 16, 128>}]} {
    %c0 = arith.constant 0 : index
    %c0_0 = arith.constant 0 : index
    %c0_1 = arith.constant 0 : index
    %c0_2 = arith.constant 0 : index
    %0 = vector.load %arg2[%c0, %c0_0, %c0_1, %c0_2] : memref<1x16x18x4xbf16, #tpu.memory_space<vmem>>, vector<1x16x18x4xbf16>
    %1 = vector.shape_cast %0 : vector<1x16x18x4xbf16> to vector<16x18x4xbf16>
    %c0_3 = arith.constant 0 : index
    %c0_4 = arith.constant 0 : index
    %c0_5 = arith.constant 0 : index
    %c0_6 = arith.constant 0 : index
    %2 = vector.load %arg3[%c0_3, %c0_4, %c0_5, %c0_6] : memref<1x2x18x4xbf16, #tpu.memory_space<vmem>>, vector<1x2x18x4xbf16>
    %3 = vector.shape_cast %2 : vector<1x2x18x4xbf16> to vector<2x18x4xbf16>
    %4 = tpu.concatenate %1, %3 in 0 : vector<16x18x4xbf16>, vector<2x18x4xbf16> -> vector<18x18x4xbf16>
    %5 = vector.extract_strided_slice %4 {offsets = [0, 0, 0], sizes = [16, 16, 4], strides = [1, 1, 1]} : vector<18x18x4xbf16> to vector<16x16x4xbf16>
    %6 = vector.extract_strided_slice %4 {offsets = [0, 1, 0], sizes = [16, 16, 4], strides = [1, 1, 1]} : vector<18x18x4xbf16> to vector<16x16x4xbf16>
    %7 = vector.extract_strided_slice %4 {offsets = [0, 2, 0], sizes = [16, 16, 4], strides = [1, 1, 1]} : vector<18x18x4xbf16> to vector<16x16x4xbf16>
    %8 = tpu.concatenate %5, %6, %7 in 2 : vector<16x16x4xbf16>, vector<16x16x4xbf16>, vector<16x16x4xbf16> -> vector<16x16x12xbf16>
    %9 = vector.shape_cast %8 : vector<16x16x12xbf16> to vector<256x12xbf16>
    %c0_7 = arith.constant 0 : index
    %c0_8 = arith.constant 0 : index
    %c0_9 = arith.constant 0 : index
    %10 = vector.load %arg4[%c0_7, %c0_8, %c0_9] : memref<3x12x256xbf16, #tpu.memory_space<vmem>>, vector<1x12x256xbf16>
    %11 = vector.shape_cast %10 : vector<1x12x256xbf16> to vector<12x256xbf16>
    %cst = arith.constant dense<0.000000e+00> : vector<256x256xf32>
    %12 = tpu.matmul %9, %11, %cst {dimension_numbers = #tpu.dot_dimension_numbers<[1], [0], [0], [1], [0, 0, 1, 1], [], []>} : vector<256x12xbf16>, vector<12x256xbf16>, vector<256x256xf32> -> vector<256x256xf32>
    %c0_10 = arith.constant 0 : index
    %c0_11 = arith.constant 0 : index
    %13 = vector.load %arg10[%c0_10, %c0_11] : memref<256x256xf32, #tpu.memory_space<vmem>>, vector<256x256xf32>
    tpu.vector_store %arg10[%c0_10, %c0_11], %12 {strides = array<i32>} : memref<256x256xf32, #tpu.memory_space<vmem>>, vector<256x256xf32>,
    %14 = vector.extract_strided_slice %4 {offsets = [1, 0, 0], sizes = [16, 16, 4], strides = [1, 1, 1]} : vector<18x18x4xbf16> to vector<16x16x4xbf16>
    %15 = vector.extract_strided_slice %4 {offsets = [1, 1, 0], sizes = [16, 16, 4], strides = [1, 1, 1]} : vector<18x18x4xbf16> to vector<16x16x4xbf16>
    %16 = vector.extract_strided_slice %4 {offsets = [1, 2, 0], sizes = [16, 16, 4], strides = [1, 1, 1]} : vector<18x18x4xbf16> to vector<16x16x4xbf16>
    %17 = tpu.concatenate %14, %15, %16 in 2 : vector<16x16x4xbf16>, vector<16x16x4xbf16>, vector<16x16x4xbf16> -> vector<16x16x12xbf16>
    %18 = vector.shape_cast %17 : vector<16x16x12xbf16> to vector<256x12xbf16>
    %c1 = arith.constant 1 : index
    %c0_12 = arith.constant 0 : index
    %c0_13 = arith.constant 0 : index
    %19 = vector.load %arg4[%c1, %c0_12, %c0_13] : memref<3x12x256xbf16, #tpu.memory_space<vmem>>, vector<1x12x256xbf16>
    %20 = vector.shape_cast %19 : vector<1x12x256xbf16> to vector<12x256xbf16>
    %cst_14 = arith.constant dense<0.000000e+00> : vector<256x256xf32>
    %21 = tpu.matmul %18, %20, %cst_14 {dimension_numbers = #tpu.dot_dimension_numbers<[1], [0], [0], [1], [0, 0, 1, 1], [], []>} : vector<256x12xbf16>, vector<12x256xbf16>, vector<256x256xf32> -> vector<256x256xf32>
    %c0_15 = arith.constant 0 : index
    %c0_16 = arith.constant 0 : index
    %22 = vector.load %arg10[%c0_15, %c0_16] : memref<256x256xf32, #tpu.memory_space<vmem>>, vector<256x256xf32>
    %23 = arith.addf %22, %21 : vector<256x256xf32>
    %c0_17 = arith.constant 0 : index
    %c0_18 = arith.constant 0 : index
    %24 = vector.load %arg10[%c0_17, %c0_18] : memref<256x256xf32, #tpu.memory_space<vmem>>, vector<256x256xf32>
    tpu.vector_store %arg10[%c0_17, %c0_18], %23 {strides = array<i32>} : memref<256x256xf32, #tpu.memory_space<vmem>>, vector<256x256xf32>,
    %25 = vector.extract_strided_slice %4 {offsets = [2, 0, 0], sizes = [16, 16, 4], strides = [1, 1, 1]} : vector<18x18x4xbf16> to vector<16x16x4xbf16>
    %26 = vector.extract_strided_slice %4 {offsets = [2, 1, 0], sizes = [16, 16, 4], strides = [1, 1, 1]} : vector<18x18x4xbf16> to vector<16x16x4xbf16>
    %27 = vector.extract_strided_slice %4 {offsets = [2, 2, 0], sizes = [16, 16, 4], strides = [1, 1, 1]} : vector<18x18x4xbf16> to vector<16x16x4xbf16>
    %28 = tpu.concatenate %25, %26, %27 in 2 : vector<16x16x4xbf16>, vector<16x16x4xbf16>, vector<16x16x4xbf16> -> vector<16x16x12xbf16>
    %29 = vector.shape_cast %28 : vector<16x16x12xbf16> to vector<256x12xbf16>
    %c2 = arith.constant 2 : index
    %c0_19 = arith.constant 0 : index
    %c0_20 = arith.constant 0 : index
    %30 = vector.load %arg4[%c2, %c0_19, %c0_20] : memref<3x12x256xbf16, #tpu.memory_space<vmem>>, vector<1x12x256xbf16>
    %31 = vector.shape_cast %30 : vector<1x12x256xbf16> to vector<12x256xbf16>
    %cst_21 = arith.constant dense<0.000000e+00> : vector<256x256xf32>
    %32 = tpu.matmul %29, %31, %cst_21 {dimension_numbers = #tpu.dot_dimension_numbers<[1], [0], [0], [1], [0, 0, 1, 1], [], []>} : vector<256x12xbf16>, vector<12x256xbf16>, vector<256x256xf32> -> vector<256x256xf32>
    %c0_22 = arith.constant 0 : index
    %c0_23 = arith.constant 0 : index
    %33 = vector.load %arg10[%c0_22, %c0_23] : memref<256x256xf32, #tpu.memory_space<vmem>>, vector<256x256xf32>
    %34 = arith.addf %33, %32 : vector<256x256xf32>
    %c0_24 = arith.constant 0 : index
    %c0_25 = arith.constant 0 : index
    %35 = vector.load %arg10[%c0_24, %c0_25] : memref<256x256xf32, #tpu.memory_space<vmem>>, vector<256x256xf32>
    tpu.vector_store %arg10[%c0_24, %c0_25], %34 {strides = array<i32>} : memref<256x256xf32, #tpu.memory_space<vmem>>, vector<256x256xf32>,
    %c0_26 = arith.constant 0 : index
    %c0_27 = arith.constant 0 : index
    %36 = vector.load %arg10[%c0_26, %c0_27] : memref<256x256xf32, #tpu.memory_space<vmem>>, vector<256x256xf32>
    %c0_28 = arith.constant 0 : index
    %c0_29 = arith.constant 0 : index
    %37 = vector.load %arg5[%c0_28, %c0_29] : memref<1x256xf32, #tpu.memory_space<vmem>>, vector<1x256xf32>
    %38 = vector.broadcast %37 : vector<1x256xf32> to vector<256x256xf32>
    %39 = arith.mulf %36, %38 : vector<256x256xf32>
    %c0_30 = arith.constant 0 : index
    %c0_31 = arith.constant 0 : index
    %40 = vector.load %arg6[%c0_30, %c0_31] : memref<1x256xf32, #tpu.memory_space<vmem>>, vector<1x256xf32>
    %41 = vector.broadcast %40 : vector<1x256xf32> to vector<256x256xf32>
    %42 = arith.addf %39, %41 : vector<256x256xf32>
    %cst_32 = arith.constant 0.000000e+00 : f32
    %43 = vector.broadcast %cst_32 : f32 to vector<256x256xf32>
    %44 = arith.maximumf %42, %43 : vector<256x256xf32>
    %45 = arith.truncf %44 : vector<256x256xf32> to vector<256x256xbf16>
    %c0_33 = arith.constant 0 : index
    %c0_34 = arith.constant 0 : index
    %46 = vector.load %arg7[%c0_33, %c0_34] : memref<256x128xbf16, #tpu.memory_space<vmem>>, vector<256x128xbf16>
    %cst_35 = arith.constant dense<0.000000e+00> : vector<256x128xf32>
    %47 = tpu.matmul %45, %46, %cst_35 {dimension_numbers = #tpu.dot_dimension_numbers<[1], [0], [0], [1], [0, 0, 1, 1], [], []>} : vector<256x256xbf16>, vector<256x128xbf16>, vector<256x128xf32> -> vector<256x128xf32>
    %c0_36 = arith.constant 0 : index
    %c0_37 = arith.constant 0 : index
    %48 = vector.load %arg8[%c0_36, %c0_37] : memref<1x128xf32, #tpu.memory_space<vmem>>, vector<1x128xf32>
    %49 = vector.broadcast %48 : vector<1x128xf32> to vector<256x128xf32>
    %50 = arith.addf %47, %49 : vector<256x128xf32>
    %51 = vector.shape_cast %50 : vector<256x128xf32> to vector<16x16x128xf32>
    %c0_38 = arith.constant 0 : index
    %c0_39 = arith.constant 0 : index
    %c0_40 = arith.constant 0 : index
    %c0_41 = arith.constant 0 : index
    %52 = vector.load %arg9[%c0_38, %c0_39, %c0_40, %c0_41] : memref<1x16x16x128xf32, #tpu.memory_space<vmem>>, vector<1x16x16x128xf32>
    %53 = vector.shape_cast %52 : vector<1x16x16x128xf32> to vector<16x16x128xf32>
    %54 = vector.shape_cast %51 : vector<16x16x128xf32> to vector<1x16x16x128xf32>
    tpu.vector_store %arg9[%c0_38, %c0_39, %c0_40, %c0_41], %54 {strides = array<i32>} : memref<1x16x16x128xf32, #tpu.memory_space<vmem>>, vector<1x16x16x128xf32>,
    return
  }
  func.func @transform_0(%arg0: i32, %arg1: i32) -> (i32, i32, i32, i32) {
    %c0_i32 = arith.constant 0 : i32
    %c0_i32_0 = arith.constant 0 : i32
    %c0_i32_1 = arith.constant 0 : i32
    return %arg0, %arg1, %c0_i32, %c0_i32_0 : i32, i32, i32, i32
  }
  func.func @transform_1(%arg0: i32, %arg1: i32) -> (i32, i32, i32, i32) {
    %c1_i32 = arith.constant 1 : i32
    %0 = arith.addi %arg1, %c1_i32 : i32
    %c8_i32 = arith.constant 8 : i32
    %1 = arith.muli %0, %c8_i32 : i32
    %c0_i32 = arith.constant 0 : i32
    %c0_i32_0 = arith.constant 0 : i32
    %c0_i32_1 = arith.constant 0 : i32
    return %arg0, %1, %c0_i32, %c0_i32_0 : i32, i32, i32, i32
  }
  func.func @transform_2(%arg0: i32, %arg1: i32) -> (i32, i32, i32) {
    %c0_i32 = arith.constant 0 : i32
    %c0_i32_0 = arith.constant 0 : i32
    %c0_i32_1 = arith.constant 0 : i32
    %c0_i32_2 = arith.constant 0 : i32
    return %c0_i32, %c0_i32_0, %c0_i32_1 : i32, i32, i32
  }
  func.func @transform_3(%arg0: i32, %arg1: i32) -> (i32, i32) {
    %c0_i32 = arith.constant 0 : i32
    %c0_i32_0 = arith.constant 0 : i32
    %c0_i32_1 = arith.constant 0 : i32
    return %c0_i32, %c0_i32_0 : i32, i32
  }
  func.func @transform_4(%arg0: i32, %arg1: i32) -> (i32, i32) {
    %c0_i32 = arith.constant 0 : i32
    %c0_i32_0 = arith.constant 0 : i32
    %c0_i32_1 = arith.constant 0 : i32
    return %c0_i32, %c0_i32_0 : i32, i32
  }
  func.func @transform_5(%arg0: i32, %arg1: i32) -> (i32, i32) {
    %c0_i32 = arith.constant 0 : i32
    %c0_i32_0 = arith.constant 0 : i32
    %c0_i32_1 = arith.constant 0 : i32
    return %c0_i32, %c0_i32_0 : i32, i32
  }
  func.func @transform_6(%arg0: i32, %arg1: i32) -> (i32, i32) {
    %c0_i32 = arith.constant 0 : i32
    %c0_i32_0 = arith.constant 0 : i32
    %c0_i32_1 = arith.constant 0 : i32
    return %c0_i32, %c0_i32_0 : i32, i32
  }
  func.func @transform_7(%arg0: i32, %arg1: i32) -> (i32, i32, i32, i32) {
    %c0_i32 = arith.constant 0 : i32
    %c0_i32_0 = arith.constant 0 : i32
    %c0_i32_1 = arith.constant 0 : i32
    return %arg0, %arg1, %c0_i32, %c0_i32_0 : i32, i32, i32, i32
  }
}

</mosaic_0001>

<bundles_post_ra>
// kernel: tpu_custom_call.1
= control target key start
LH: loop header
LB: loop body
LE: loop exit
PB: predicated region body
PF: predicated region fallthrough
CT: control target
= control target key end

     0   :  { %7 = vsyncpa [#allocation3], 0  ;;  %s692_s0 = inlined_call_operand.hbm [shape: f32[8,128], index: 0, kind: input, shape index: {}]   ;;  %s693_s1 = inlined_call_operand.hbm [shape: f32[16,128], index: 1, kind: input, shape index: {}]   ;;  %s694_s2 = inlined_call_operand.hbm [shape: f32[16,128], index: 2, kind: output, shape index: {}]  }
   0x1   :  { %8 = vsyncpa [#allocation6], 0 }
   0x2   :  { %10 = vsyncpa [#allocation6 + $0x1], 0 }
   0x3   :  { %11 = vsyncpa [#allocation4], 0 }
   0x4   :  { %13 = vsyncpa [#allocation4 + $0x1], 0  ;;  %s491_s9 = smov 0   ;;  %s493_s10 = smov 0  }
   0x5   :  { %s495_s11 = smov 0   ;;  %s497_s12 = smov 0  }
   0x6 LB: > { %s512_s13 = sadd.s32 4294967295, %s471_s12   ;;  %s272_s14 = sadd.s32 4294967294, %s471_s12   ;;  %s471_s12 = sphi %s497_s12, %s718_s12   ;;  %s467_s11 = sphi %s495_s11, %s717_s11   ;;  %s463_s10 = sphi %s493_s10, %s716_s10   ;;  %s459_s9 = sphi %s491_s9, %s715_s9  }
   0x7   : > { %p60_p0 = scmp.ne.s32.totalorder %s463_s10, %s459_s9  ;;  %p695_p1 = scmp.eq.s32.totalorder %s512_s13, 0 }
   0x8   : > { %p90_p3 = scmp.eq.s32.totalorder %s272_s14, 1  ;;  %p273_p5 = scmp.ge.s32.totalorder %s471_s12, 1 }
   0x9   : > { %p521_p4 = por %p695_p1, %p60_p0  ;;  %p97_p7 = scmp.lt.s32.totalorder %s471_s12, 3 }
   0xa   : > { %p526_p6 = por %p90_p3, %p60_p0  ;;  %s473_s18 = smov [#allocation2]  }
   0xb   : > { %s698_s15 = scalar_select %p521_p4, 1, 0 }
   0xc   : > { %s699_s16 = scalar_select %p526_p6, 1, 0 }
   0xd   : > { %p531_p8 = pnand %p273_p5, %p97_p7  ;;  %s110_s19 = sshll.u32 %s473_s18, 4  ;;  %s111_s19 = int_to_ptr.vmem [resolvable:$true] %s110_s19 }
   0xe   : > { %s539_s20 = sadd.s32 1, %s471_s12   ;;  %s47_s24 = sadd.s32 1, %s467_s11 }
   0xf   : > { %s700_s17 = scalar_select %p531_p8, 1, 0 }
  0x10   : > { %p294_p10 = pneg %p531_p8  ;;  %s44_s22 = ssub.s32 %s471_s12, %s539_s20 }
  0x11   : > { %p549_p12 = scmp.eq.s32.totalorder %s44_s22, 0  ;;  %s343_s27 = scalar_lea.hbm %s692_s0, 128 }
  0x12   : > { %p543_p11 = pnand %p294_p10, %p695_p1  ;;  %p344_p0 = scmp.ne.s32.totalorder %s692_s0, %s343_s27 }
  0x13   : > { %s702_s23 = scalar_select %p549_p12, 1, 0 }
  0x14   : > { %p345_p3 = pneg %p543_p11  ;;  %p350_p10 = scmp.lt.u32.totalorder %s343_s27, %s692_s0 }
  0x16   : > { %p346_p5 = pnand %p345_p3, %p344_p0 }
  0x18   : > { %p347_p7 = pneg %p346_p5 }
  0x1a   : > { %p352_p9 = pnand %p350_p10, %p347_p7 }
  0x1c   : > { %355 = shalt.err (!%p352_p9)
}
  0x1d   : > { %s356_s4 = scalar_lea.vmem %s111_s19, 128  ;;  %p364_p6 = scmp.lt.s32.totalorder %s111_s19, %s111_s19 }
  0x1e   : > { %p357_p1 = scmp.ne.s32.totalorder %s111_s19, %s356_s4  ;;  %p365_p4 = scmp.lt.s32.totalorder %s356_s4, %s356_s4 }
  0x20   : > { %p359_p2 = pnand %p357_p1, %p345_p3  ;;  %p366_p8 = por %p365_p4, %p364_p6 }
  0x22   : > { %p360_p13 = pneg %p359_p2 }
  0x24   : > { %p367_p12 = pnand %p366_p8, %p360_p13 }
  0x26   : > { %370 = shalt.err (!%p367_p12)
}
  0x27   : > { %297 = dma.hbm_to_vmem [thread:$0]  (!%p543_p11), %s692_s0, 128, %s111_s19, [#allocation3]  }
  0x28   : > { %p703_p1 = scmp.ne.s32.totalorder %s702_s23, 0  ;;  %p55_p2 = scmp.eq.s32.totalorder %s471_s12, 0 }
  0x29   : > { %p704_p4 = scmp.ne.s32.totalorder %s467_s11, %s463_s10  ;;  %p705_p6 = scmp.eq.s32.totalorder %s512_s13, 1 }
  0x2a   : > { %s575_s7 = scalar_select %p703_p1, %s467_s11, %s47_s24  }
  0x2b   : > { %p583_p8 = por %p705_p6, %p704_p4  ;;  %p307_p9 = scmp.lt.s32.totalorder %s471_s12, 2 }
  0x2c   : > { %s121_s14 = sand.u32 1, %s467_s11   ;;  %p707_p12 = pmov %p704_p4 }
  0x2d   : > { %s276_s18 = sshll.u32 %s121_s14, 3  ;;  %s277_s21 = sshll.u32 %s471_s12, 7 }
  0x2e   : > { %p56_p13 = por %p55_p2, %p707_p12  ;;  %s596_s19 = scalar_lea.hbm %s693_s1, %s277_s21 }
  0x2f   : > { %s125_s23 = scalar_lea.vmem [#allocation5], %s276_s18  ;;  %s122_s27 = scalar_lea.sflag [#allocation6], %s121_s14 }
  0x30   : > { %s132_s24 = sshll.u32 %s125_s23, 4  ;;  %p598_p11 = pnand %p307_p9, %p56_p13  ;;  %s602_s24 = int_to_ptr.vmem [resolvable:$true] %s132_s24 }
  0x31   : > { %s371_s28 = scalar_lea.hbm %s596_s19, 128  ;;  %s376_s3 = scalar_lea.hbm %s693_s1, 256 }
  0x32   : > { %p372_p0 = scmp.ne.s32.totalorder %s596_s19, %s371_s28  ;;  %p373_p3 = pneg %p598_p11 }
  0x33   : > { %p377_p10 = scmp.lt.u32.totalorder %s596_s19, %s693_s1  ;;  %p378_p1 = scmp.lt.u32.totalorder %s376_s3, %s371_s28 }
  0x34   : > { %p374_p5 = pnand %p373_p3, %p372_p0  ;;  %p380_p4 = scmp.lt.u32.totalorder %s371_s28, %s596_s19 }
  0x35   : > { %p379_p2 = por %p378_p1, %p377_p10 }
  0x36   : > { %p375_p7 = pneg %p374_p5 }
  0x37   : > { %p381_p6 = por %p380_p4, %p379_p2 }
  0x39   : > { %p382_p9 = pnand %p381_p6, %p375_p7 }
  0x3b   : > { %385 = shalt.err (!%p382_p9)
}
  0x3c   : > { %s386_s6 = scalar_lea.vmem %s602_s24, 128  ;;  %s474_s14 = smov [#allocation5]  }
  0x3d   : > { %p387_p12 = scmp.ne.s32.totalorder %s602_s24, %s386_s6  ;;  %s391_s18 = sshll.u32 %s474_s14, 4  ;;  %s392_s18 = int_to_ptr.vmem [resolvable:$false] %s391_s18 }
  0x3e   : > { %s393_s21 = scalar_lea.vmem %s392_s18, 256  ;;  %p394_p5 = scmp.lt.s32.totalorder %s602_s24, %s392_s18 }
  0x3f   : > { %p389_p13 = pnand %p387_p12, %p373_p3  ;;  %p395_p10 = scmp.lt.s32.totalorder %s393_s21, %s386_s6 }
  0x41   : > { %p390_p0 = pneg %p389_p13  ;;  %p396_p1 = por %p395_p10, %p394_p5 }
  0x43   : > { %p397_p2 = pnand %p396_p1, %p390_p0 }
  0x45   : > { %400 = shalt.err (!%p397_p2)
}
  0x46   : > { %301 = dma.hbm_to_vmem [thread:$0]  (!%p598_p11), %s596_s19, 128, %s602_s24, %s122_s27  }
  0x47   : > { %p709_p7 = scmp.ne.s32.totalorder %s700_s17, 0 }
  0x48   : > { %p710_p3 = scmp.eq.s32.totalorder (!%p709_p7), %s512_s13, 0 }
  0x49   : > { %141 = sbr.rel (%p709_p7) target bundleno = 110 (0x6e), region = 28 }
  0x50   : > { %446 = dma.done.wait (%p710_p3), [#allocation3], 128   ;;  %p711_p4 = pmov %p710_p3 }
  0x51   : > { %s636_s22 = sand.u32 1, %s463_s10   ;;  %p712_p6 = scmp.ne.s32.totalorder %s698_s15, 0 }
  0x52   : > { %448 = vsyncadd (%p711_p4), [#allocation3], 4294967168  ;;  %s280_s25 = sshll.u32 %s636_s22, 3  ;;  %s148_s23 = scalar_lea.sflag [#allocation6], %s636_s22 }
  0x53   : > { %s151_s26 = scalar_lea.vmem [#allocation5], %s280_s25 }
  0x54   : > { %450 = dma.done.wait (%p712_p6), %s148_s23, 128  }
  0x55   : > { %452 = vsyncadd (%p712_p6), %s148_s23, 4294967168  ;;  %s171_s17 = scalar_lea.vmem [#allocation7], %s280_s25  ;;  %s283_s24 = sshll.u32 %s512_s13, 7  ;;  %v172_v0 = vld [vmem:[%s151_s26] sm:$0xff]  ;;  %v173_v1 = vld [vmem:[#allocation2] sm:$0xff] }
  0x56   : > { %s190_s19 = sshll.u32 %s171_s17, 4  ;;  %v174_v2 = vadd.f32 %v173_v1, %v172_v0  ;;  %s650_s29 = scalar_lea.hbm %s694_s2, %s283_s24  ;;  %s645_s19 = int_to_ptr.vmem [resolvable:$true] %s190_s19 }
  0x57   : > { %s177_s15 = scalar_lea.sflag [#allocation4], %s636_s22  ;;  %s401_s30 = scalar_lea.vmem %s645_s19, 128 }
  0x58   : > { %175 = vst [vmem:[%s171_s17] sm:$0xff] %v174_v2  ;;  %p402_p11 = scmp.ne.s32.totalorder %s645_s19, %s401_s30  ;;  %s475_s13 = smov [#allocation7]  }
  0x59   : > { %s405_s3 = sshll.u32 %s475_s13, 4  ;;  %s406_s3 = int_to_ptr.vmem [resolvable:$false] %s405_s3 }
  0x5a   : > { %p403_p9 = pnand %p402_p11, %p583_p8  ;;  %s407_s4 = scalar_lea.vmem %s406_s3, 256 }
  0x5b   : > { %p408_p13 = scmp.lt.s32.totalorder %s645_s19, %s406_s3  ;;  %p409_p0 = scmp.lt.s32.totalorder %s407_s4, %s401_s30 }
  0x5c   : > { %p404_p12 = pneg %p403_p9 }
  0x5d   : > { %p410_p5 = por %p409_p0, %p408_p13 }
  0x5f   : > { %p411_p10 = pnand %p410_p5, %p404_p12 }
  0x61   : > { %414 = shalt.err (!%p411_p10)
}
  0x62   : > { %s415_s5 = scalar_lea.hbm %s650_s29, 128  ;;  %s419_s18 = scalar_lea.hbm %s694_s2, 256 }
  0x63   : > { %p416_p1 = scmp.ne.s32.totalorder %s650_s29, %s415_s5  ;;  %p420_p3 = scmp.lt.u32.totalorder %s650_s29, %s694_s2 }
  0x64   : > { %p421_p4 = scmp.lt.u32.totalorder %s419_s18, %s415_s5  ;;  %p423_p11 = scmp.lt.u32.totalorder %s415_s5, %s650_s29 }
  0x65   : > { %p417_p2 = pnand %p416_p1, %p583_p8 }
  0x66   : > { %p422_p6 = por %p421_p4, %p420_p3 }
  0x67   : > { %p418_p7 = pneg %p417_p2 }
  0x68   : > { %p424_p9 = por %p423_p11, %p422_p6 }
  0x6a   : > { %p425_p12 = pnand %p424_p9, %p418_p7 }
  0x6c   : > { %428 = shalt.err (!%p425_p12)
}
  0x6d   : > { %292 = dma.vmem_to_hbm [thread:$0]  (%p583_p8), %s645_s19, 128, %s650_s29, %s177_s15  }
  0x6e PF: > { %s202_s25 = sand.u32 1, %s459_s9   ;;  %p713_p13 = scmp.ne.s32.totalorder %s699_s16, 0 }
  0x6f   : > { %p714_p0 = scmp.ge.s32.totalorder %s471_s12, 2  ;;  %s203_s23 = scalar_lea.sflag [#allocation4], %s202_s25 }
  0x71   : > { %p303_p5 = pnand %p714_p0, %p713_p13 }
  0x73   : > { %454 = dma.done.wait (!%p303_p5), %s203_s23, 128  }
  0x74   : > { %456 = vsyncadd (!%p303_p5), %s203_s23, 4294967168  ;;  %p16_p10 = scmp.ge.s32.totalorder %s539_s20, 4   ;;  %s715_s9 = smov %s463_s10 }
  0x75   : > { %s716_s10 = smov %s467_s11  ;;  %s717_s11 = smov %s575_s7 }
  0x76   : > { %s718_s12 = smov %s539_s20  ;;  %18 = sbr.rel (!%p16_p10) target bundleno = 6 (0x6), region = 78 }
  0x7d   :  { %208 = vsyncpa [#allocation3], 1 }
  0x7e   :  { %210 = vsyncpa [#allocation3 + $0x1], 1 }
  0x7f   :  { %211 = vsyncpa [#allocation6], 1 }
  0x80   :  { %213 = vsyncpa [#allocation6 + $0x1], 1 }
  0x81   :  { %214 = vsyncpa [#allocation4], 1 }
  0x82   :  { %216 = vsyncpa [#allocation4 + $0x1], 1 }

// kernel: tpu_custom_call.1
= control target key start
LH: loop header
LB: loop body
LE: loop exit
PB: predicated region body
PF: predicated region fallthrough
CT: control target
= control target key end

     0   :  { %12 = vsyncpa [#allocation4], 0  ;;  %s4545_s0 = inlined_call_operand.vmem [shape: bf16[2,18,18,4], index: 0, kind: input, shape index: {}]   ;;  %s4546_s1 = inlined_call_operand.vmem [shape: bf16[2,18,18,4], index: 1, kind: input, shape index: {}]   ;;  %s4547_s2 = inlined_call_operand.vmem [shape: bf16[3,12,256], index: 2, kind: input, shape index: {}]   ;;  %s4548_s3 = inlined_call_operand.vmem [shape: f32[1,256], index: 3, kind: input, shape index: {}]   ;;  %s4549_s4 = inlined_call_operand.vmem [shape: f32[1,256], index: 4, kind: input, shape index: {}]   ;;  %s4550_s5 = inlined_call_operand.vmem [shape: bf16[256,128], index: 5, kind: input, shape index: {}]   ;;  %s4551_s6 = inlined_call_operand.vmem [shape: f32[1,128], index: 6, kind: input, shape index: {}]   ;;  %s4552_s7 = inlined_call_operand.hbm [shape: f32[2,16,16,128], index: 7, kind: output, shape index: {}]  }
   0x1   :  { %14 = vsyncpa [#allocation4 + $0x1], 0  ;;  %s3499_s24 = smov 0   ;;  %s3501_s25 = smov 0  }
   0x2   :  { %s3503_s26 = smov 0   ;;  %s3505_s27 = smov 0  }
   0x3   :  { %s3507_s28 = smov 0   ;;  %s3509_s29 = smov 0  }
   0x4 LB: > { %s2881_s30 = sadd.s32 4294967295, %s3452_s29   ;;  %s2882_s8 = sadd.s32 4294967294, %s3452_s29   ;;  %s3452_s29 = sphi %s3509_s29, %s20_s29   ;;  %s3448_s28 = sphi %s3507_s28, %s4559_s28   ;;  %s3444_s27 = sphi %s3505_s27, %s4558_s27   ;;  %s3440_s26 = sphi %s3503_s26, %s4557_s26   ;;  %s3436_s25 = sphi %s3501_s25, %s4556_s25   ;;  %s3432_s24 = sphi %s3499_s24, %s4555_s24  }
   0x5   : > { %s32_s9 = sadd.s32 1, %s3448_s28  ;;  %s206_s10 = sadd.s32 1, %s3440_s26 }
   0x6   : > { %p34_p0 = scmp.ge.s32.totalorder %s32_s9, 2  ;;  %p216_p1 = scmp.ne.s32.totalorder %s3440_s26, %s3436_s25 }
   0x7   : > { %p217_p2 = scmp.eq.s32.totalorder %s2881_s30, 1  ;;  %p222_p3 = scmp.ne.s32.totalorder %s3436_s25, %s3432_s24 }
   0x8   : > { %s4561_s9 = smov (%p34_p0, %s32_s9), 0  ;;  %p223_p5 = scmp.eq.s32.totalorder %s2882_s8, 1 }
   0x9   : > { %p3539_p4 = por %p217_p2, %p216_p1  ;;  %s201_s12 = ssub.s32 %s3448_s28, %s4561_s9 }
   0xa   : > { %p2885_p6 = scmp.ge.s32.totalorder %s3452_s29, 1  ;;  %p204_p7 = scmp.eq.s32.totalorder %s201_s12, 0 }
   0xb   : > { %p3546_p8 = por %p223_p5, %p222_p3  ;;  %p298_p9 = scmp.lt.s32.totalorder %s3452_s29, 3 }
   0xc   : > { %s3552_s14 = scalar_select %p204_p7, %s3440_s26, %s206_s10  }
   0xd   : > { %p299_p10 = pnand %p2885_p6, %p298_p9 }
   0xe   : > { %p358_p11 = scmp.lt.s32.totalorder (!%p299_p10), %s3444_s27, 1  ;;  %v3347_v0 = vld [vmem:[%s4547_s2 + $0x14] ss:$8 sps:$4 sm:$0x3f] (!%p299_p10)   ;;  %vm987_vm0 = vcmask (!%p299_p10), 1045504   ;;  %vm797_vm2 = vcmask (!%p299_p10), 1046528  }
   0xf   : > { %302 = sbr.rel (%p299_p10) target bundleno = 863 (0x35f), region = 48  ;;  %v3349_v1 = vld [vmem:[%s4547_s2 + $0x10] ss:$8 sps:$4 sm:$0x3f] (!%p299_p10)   ;;  %vm572_vm1 = vsmask.f32 (!%p299_p10), 7424  ;;  %2946 = vmatprep.subr.msk.bf16.mxu0 (!%p299_p10), %vm987_vm0, %v3347_v0 }
  0x10   : > { %v1296_v2 = vsel (!%p299_p10), %vm987_vm0, %v3349_v1, 0  ;;  %v3454_v10 = vmov (!%p299_p10), 0   ;;  %s3455_s30 = smov (!%p299_p10), 4   ;;  %s3456_s8 = smov (!%p299_p10), 8   ;;  %vm878_vm3 = vcmask (!%p299_p10), 31744   ;;  %vm911_vm4 = vcmask (!%p299_p10), 64512  }
  0x11   : > { %1302 = vmatpush1.bf16.msra.mxu0 (!%p299_p10), %v1296_v2  ;;  %1333 = vmatprep.mubr.bf16.mxu0 (!%p299_p10), %v3454_v10  ;;  %vm954_vm5 = vcmask (!%p299_p10), 97280   ;;  %s3010_s18 = sshll.u32 (!%p299_p10), %s3444_s27, 12 }
  0x12   : > { %1026 = vmatprep.mubr.bf16.mxu1 (!%p299_p10), %v3454_v10  ;;  %s4489_s22 = scalar_lea.hbm (!%p299_p10), %s4552_s7, %s3010_s18 }
  0x16   : > { %s3556_s15 = scalar_select %p358_p11, %s3444_s27, 1 }
  0x18   : > { %s3251_s20 = smul.u32 216, %s3556_s15 }
  0x1a   : > { %s3572_s23 = scalar_lea.vmem %s4545_s0, %s3251_s20  ;;  %s3009_s10 = sadd.s32 192, %s3251_s20 }
  0x1b   : > { %v3575_v3 = vld [vmem:[%s3572_s23 + $0xc] sm:$0xff]   ;;  %v3314_v4 = vld [vmem:[%s3572_s23 + $0x14] ss:$0 sps:$4 sm:$0x11]   ;;  %v3579_v5 = vld [vmem:[%s3572_s23 + $0x18] sm:$0xff]   ;;  %s3720_s16 = scalar_lea.vmem %s4546_s1, %s3009_s10  ;;  %s3457_s10 = smov [#allocation3]  }
  0x1c   : > { %v586_v6 = vshrl.u32 %v3575_v3, 16  ;;  %v588_v7 = vshll.u32 %v3575_v3, 16  ;;  %v593_v8 = vshll.u32 %v3314_v4, 16  ;;  %v3316_v9 = vld [vmem:[%s3572_s23 + $0x20] ss:$0 sps:$4 sm:$0x11]  }
  0x1d   : > { %v598_v11 = vshrl.u32 %v3579_v5, 16  ;;  %v600_v12 = vshll.u32 %v3579_v5, 16  ;;  %v801_v13 = vrot.slane %v3575_v3, 1  ;;  %v802_v14 = vrot.slane %v3314_v4, 1  ;;  %v3591_v21 = vld [vmem:[%s3572_s23 + $0x24] sm:$0xff]   ;;  %v3594_v22 = vld [vmem:[%s3572_s23 + $0x30] sm:$0xff]  }
  0x1e   : > { %v590_v15 = vrot.slane %v588_v7, 1  ;;  %v595_v16 = vrot.slane %v593_v8, 1  ;;  %v605_v17 = vshll.u32 %v3316_v9, 16  ;;  %v804_v18 = vrot.slane %v3579_v5, 1  ;;  %v3606_v36 = vld [vmem:[%s3572_s23 + $0x3c] sm:$0xff]   ;;  %v3613_v45 = vld [vmem:[%s3572_s23 + $0x48] sm:$0xff]  }
  0x1f   : > { %v602_v19 = vrot.slane %v600_v12, 1  ;;  %v805_v20 = vrot.slane %v3316_v9, 1  ;;  %v3318_v25 = vld [vmem:[%s3572_s23 + $0x2c] ss:$0 sps:$4 sm:$0x11]   ;;  %v610_v27 = vshrl.u32 %v3591_v21, 16  ;;  %v803_v33 = vsel %vm797_vm2, %v801_v13, %v802_v14 }
  0x20   : > { %v591_v23 = vor.u32 %v590_v15, %v586_v6  ;;  %v607_v24 = vrot.slane %v605_v17, 1  ;;  %v612_v28 = vshll.u32 %v3591_v21, 16  ;;  %v617_v30 = vshll.u32 %v3318_v25, 16  ;;  %v3320_v31 = vld [vmem:[%s3572_s23 + $0x38] ss:$0 sps:$4 sm:$0x11]  }
  0x21   : > { %v603_v26 = vor.u32 %v602_v19, %v598_v11  ;;  %v624_v35 = vshll.u32 %v3594_v22, 16  ;;  %v806_v37 = vsel %vm797_vm2, %v804_v18, %v805_v20  ;;  %v622_v39 = vshrl.u32 %v3594_v22, 16  ;;  %v3322_v47 = vld [vmem:[%s3572_s23 + $0x44] ss:$0 sps:$4 sm:$0x11]   ;;  %v3623_v55 = vld [vmem:[%s3572_s23 + $0x54] sm:$0xff]  }
  0x22   : > { %v596_v29 = vsel %vm572_vm1, %v591_v23, %v595_v16  ;;  %v614_v34 = vrot.slane %v612_v28, 1  ;;  %v619_v38 = vrot.slane %v617_v30, 1  ;;  %v629_v40 = vshll.u32 %v3320_v31, 16  ;;  %v3324_v54 = vld [vmem:[%s3572_s23 + $0x50] ss:$0 sps:$4 sm:$0x11]  }
  0x23   : > { %767 = vrot.lane.b32.xlu0 %v596_v29, %s3455_s30  ;;  %v608_v32 = vsel %vm572_vm1, %v603_v26, %v607_v24  ;;  %v807_v42 = vrot.slane %v3591_v21, 1  ;;  %v808_v43 = vrot.slane %v3318_v25, 1  ;;  %v626_v44 = vrot.slane %v624_v35, 1  ;;  %v3631_v0 = vld [vmem:[%s3572_s23 + $0x60] sm:$0xff]   ;;  %v3646_v19 = vld [vmem:[%s3572_s23 + $0x6c] sm:$0xff]  }
  0x24   : > { %769 = vrot.lane.b32.xlu1 %v608_v32, %s3455_s30  ;;  %v615_v41 = vor.u32 %v614_v34, %v610_v27  ;;  %v631_v46 = vrot.slane %v629_v40, 1  ;;  %v634_v48 = vshrl.u32 %v3606_v36, 16  ;;  %v636_v49 = vshll.u32 %v3606_v36, 16  ;;  %v3326_v4 = vld [vmem:[%s3572_s23 + $0x5c] ss:$0 sps:$4 sm:$0x11]  }
  0x25   : > { %v627_v51 = vor.u32 %v626_v44, %v622_v39  ;;  %v641_v53 = vshll.u32 %v3322_v47, 16  ;;  %v809_v56 = vsel %vm797_vm2, %v807_v42, %v808_v43  ;;  %v810_v57 = vrot.slane %v3594_v22, 1  ;;  %v3328_v11 = vld [vmem:[%s3572_s23 + $0x68] ss:$0 sps:$4 sm:$0x11]  }
  0x26   : > { %v620_v50 = vsel %vm572_vm1, %v615_v41, %v619_v38  ;;  %v638_v52 = vrot.slane %v636_v49, 1  ;;  %v811_v58 = vrot.slane %v3320_v31, 1  ;;  %v648_v59 = vshll.u32 %v3613_v45, 16  ;;  %v3330_v28 = vld [vmem:[%s3572_s23 + $0x74] ss:$0 sps:$4 sm:$0x11]  }
  0x27   : > { %848 = vrot.lane.b32.xlu0 %v803_v33, %s3456_s8  ;;  %v643_v60 = vrot.slane %v641_v53, 1  ;;  %v646_v61 = vshrl.u32 %v3613_v45, 16  ;;  %v653_v63 = vshll.u32 %v3324_v54, 16  ;;  %v632_v1 = vsel %vm572_vm1, %v627_v51, %v631_v46  ;;  %v3657_v33 = vld [vmem:[%s3572_s23 + $0x78] sm:$0xff]   ;;  %v3663_v40 = vld [vmem:[%s3572_s23 + $0x84] sm:$0xff]  }
  0x28   : > { %850 = vrot.lane.b32.xlu1 %v806_v37, %s3456_s8  ;;  %v650_v62 = vrot.slane %v648_v59, 1  ;;  %v639_v2 = vor.u32 %v638_v52, %v634_v48  ;;  %v660_v6 = vshll.u32 %v3623_v55, 16  ;;  %v812_v7 = vsel %vm797_vm2, %v810_v57, %v811_v58  ;;  %v3332_v42 = vld [vmem:[%s3572_s23 + $0x80] ss:$0 sps:$4 sm:$0x11]   ;;  %v3680_v58 = vld [vmem:[%s3572_s23 + $0x90] sm:$0xff]  }
  0x29   : > { %v813_v8 = vrot.slane %v3606_v36, 1  ;;  %v814_v9 = vrot.slane %v3322_v47, 1  ;;  %v655_v13 = vrot.slane %v653_v63, 1  ;;  %v658_v14 = vshrl.u32 %v3623_v55, 16 }
  0x2a   : > { %v651_v12 = vor.u32 %v650_v62, %v646_v61  ;;  %v644_v15 = vsel %vm572_vm1, %v639_v2, %v643_v60  ;;  %v662_v16 = vrot.slane %v660_v6, 1  ;;  %v665_v17 = vshll.u32 %v3326_v4, 16  ;;  %v3673_v51 = vld [vmem:[%s3572_s23 + $0x8c] ss:$0 sps:$4 sm:$0x11]  }
  0x2b   : > { %771 = vrot.lane.b32.xlu0 %v620_v50, %s3455_s30  ;;  %v672_v18 = vshll.u32 %v3631_v0, 16  ;;  %v815_v20 = vsel %vm797_vm2, %v813_v8, %v814_v9  ;;  %v816_v23 = vrot.slane %v3613_v45, 1  ;;  %v817_v24 = vrot.slane %v3324_v54, 1  ;;  %v3685_v62 = vld [vmem:[%s3572_s23 + $0x98] ss:$0 sps:$4 sm:$0x11]  }
  0x2c   : > { %852 = vrot.lane.b32.xlu1 %v809_v56, %s3456_s8  ;;  %v677_v25 = vshll.u32 %v3328_v11, 16  ;;  %v656_v26 = vsel %vm572_vm1, %v651_v12, %v655_v13  ;;  %v670_v27 = vshrl.u32 %v3631_v0, 16  ;;  %v663_v29 = vor.u32 %v662_v16, %v658_v14  ;;  %v3695_v13 = vld [vmem:[%s3572_s23 + $0x9c] sm:$0xff]  }
  0x2d   : > { %v667_v30 = vrot.slane %v665_v17, 1  ;;  %v674_v31 = vrot.slane %v672_v18, 1  ;;  %v684_v32 = vshll.u32 %v3646_v19, 16  ;;  %v818_v34 = vsel %vm797_vm2, %v816_v23, %v817_v24  ;;  %v3703_v17 = vld [vmem:[%s3572_s23 + $0xa4] ss:$0 sps:$4 sm:$0x11]  }
  0x2e   : > { %v819_v35 = vrot.slane %v3623_v55, 1  ;;  %v820_v37 = vrot.slane %v3326_v4, 1  ;;  %v679_v38 = vrot.slane %v677_v25, 1  ;;  %v682_v39 = vshrl.u32 %v3646_v19, 16  ;;  %v3709_v25 = vld [vmem:[%s3572_s23 + $0xa8] sm:$0xff]  }
  0x2f   : > { %773 = vrot.lane.b32.xlu0 %v632_v1, %s3455_s30  ;;  %v689_v41 = vshll.u32 %v3330_v28, 16  ;;  %v668_v43 = vsel %vm572_vm1, %v663_v29, %v667_v30  ;;  %v675_v44 = vor.u32 %v674_v31, %v670_v27  ;;  %v686_v46 = vrot.slane %v684_v32, 1  ;;  %v3712_v27 = vld [vmem:[%s3572_s23 + $0xb0] ss:$0 sps:$4 sm:$0x11]  }
  0x30   : > { %854 = vrot.lane.b32.xlu1 %v812_v7, %s3456_s8  ;;  %v696_v47 = vshll.u32 %v3657_v33, 16  ;;  %v821_v48 = vsel %vm797_vm2, %v819_v35, %v820_v37  ;;  %v822_v49 = vrot.slane %v3631_v0, 1  ;;  %v823_v50 = vrot.slane %v3328_v11, 1  ;;  %v3729_v35 = vld [vmem:[%s3572_s23 + $0xbc] ss:$0 sps:$4 sm:$0x11]  }
  0x31   : > { %v825_v52 = vrot.slane %v3646_v19, 1  ;;  %v708_v53 = vshll.u32 %v3663_v40, 16  ;;  %v691_v54 = vrot.slane %v689_v41, 1  ;;  %v694_v56 = vshrl.u32 %v3657_v33, 16 }
  0x32   : > { %v701_v57 = vshll.u32 %v3332_v42, 16  ;;  %v680_v59 = vsel %vm572_vm1, %v675_v44, %v679_v38  ;;  %v687_v60 = vor.u32 %v686_v46, %v682_v39  ;;  %v698_v61 = vrot.slane %v696_v47, 1 }
  0x33   : > { %775 = vrot.lane.b32.xlu0 %v644_v15, %s3455_s30  ;;  %v824_v63 = vsel %vm797_vm2, %v822_v49, %v823_v50  ;;  %v826_v1 = vrot.slane %v3330_v28, 1  ;;  %v713_v2 = vshll.u32 %v3673_v51, 16  ;;  %v828_v4 = vrot.slane %v3657_v33, 1  ;;  %v3715_v28 = vld [vmem:[%s3572_s23 + $0xb4] sm:$0xff]  }
  0x34   : > { %856 = vrot.lane.b32.xlu1 %v815_v20, %s3456_s8  ;;  %v706_v6 = vshrl.u32 %v3663_v40, 16  ;;  %v710_v7 = vrot.slane %v708_v53, 1  ;;  %v703_v8 = vrot.slane %v701_v57, 1  ;;  %v829_v9 = vrot.slane %v3332_v42, 1  ;;  %v3735_v42 = vld [vmem:[%s3720_s16] sm:$0xff]  }
  0x35   : > { %v831_v11 = vrot.slane %v3663_v40, 1  ;;  %v720_v12 = vshll.u32 %v3680_v58, 16  ;;  %v692_v14 = vsel %vm572_vm1, %v687_v60, %v691_v54  ;;  %v699_v15 = vor.u32 %v698_v61, %v694_v56  ;;  %v3344_v56 = vld [vmem:[%s3720_s16 + $0x8] ss:$0 sps:$4 sm:$0x11]  }
  0x36   : > { %v832_v16 = vrot.slane %v3673_v51, 1  ;;  %v827_v18 = vsel %vm797_vm2, %v825_v52, %v826_v1  ;;  %v715_v20 = vrot.slane %v713_v2, 1  ;;  %v718_v23 = vshrl.u32 %v3680_v58, 16  ;;  %v3350_v60 = vld [vmem:[%s4547_s2 + $0x24] ss:$8 sps:$4 sm:$0x3f]  }
  0x37   : > { %777 = vrot.lane.b32.xlu0 %v656_v26, %s3455_s30  ;;  %v725_v24 = vshll.u32 %v3685_v62, 16  ;;  %v711_v26 = vor.u32 %v710_v7, %v706_v6  ;;  %v722_v29 = vrot.slane %v720_v12, 1  ;;  %v732_v30 = vshll.u32 %v3695_v13, 16  ;;  %2969 = vmatprep.subr.msk.bf16.mxu0 %vm987_vm0, %v3350_v60  ;;  %v3806_v60 = vld [vmem:[%s3720_s16 + $0xc] sm:$0xff]  }
  0x38   : > { %858 = vrot.lane.b32.xlu1 %v818_v34, %s3456_s8  ;;  %v704_v31 = vsel %vm572_vm1, %v699_v15, %v703_v8  ;;  %v830_v32 = vsel %vm797_vm2, %v828_v4, %v829_v9  ;;  %v737_v34 = vshll.u32 %v3703_v17, 16  ;;  %v834_v38 = vrot.slane %v3680_v58, 1 }
  0x39   : > { %v727_v37 = vrot.slane %v725_v24, 1  ;;  %v835_v39 = vrot.slane %v3685_v62, 1  ;;  %v730_v41 = vshrl.u32 %v3695_v13, 16  ;;  %v837_v44 = vrot.slane %v3695_v13, 1 }
  0x3a   : > { %v744_v46 = vshll.u32 %v3709_v25, 16  ;;  %v838_v47 = vrot.slane %v3703_v17, 1  ;;  %v749_v49 = vshll.u32 %v3712_v27, 16  ;;  %v756_v50 = vshll.u32 %v3715_v28, 16  ;;  %v3765_v17 = vld [vmem:[%s3572_s23] sm:$0xff]  }
  0x3b   : > { %779 = vrot.lane.b32.xlu0 %v668_v43, %s3455_s30  ;;  %v716_v43 = vsel %vm572_vm1, %v711_v26, %v715_v20  ;;  %v723_v51 = vor.u32 %v722_v29, %v718_v23  ;;  %v734_v52 = vrot.slane %v732_v30, 1  ;;  %v739_v53 = vrot.slane %v737_v34, 1  ;;  %v3346_v24 = vld [vmem:[%s3572_s23 + $0x8] ss:$0 sps:$4 sm:$0x11]  }
  0x3c   : > { %860 = vrot.lane.b32.xlu1 %v821_v48, %s3456_s8  ;;  %v742_v48 = vshrl.u32 %v3709_v25, 16  ;;  %v761_v54 = vshll.u32 %v3729_v35, 16  ;;  %v833_v57 = vsel %vm797_vm2, %v831_v11, %v832_v16  ;;  %v746_v61 = vrot.slane %v744_v46, 1  ;;  %v3353_v26 = vld [vmem:[%s4547_s2 + $0x4] ss:$8 sps:$4 sm:$0x3f]  }
  0x3d   : > { %v840_v62 = vrot.slane %v3709_v25, 1  ;;  %v754_v1 = vshrl.u32 %v3715_v28, 16  ;;  %v751_v2 = vrot.slane %v749_v49, 1  ;;  %v758_v4 = vrot.slane %v756_v50, 1  ;;  %2923 = vmatprep.subr.msk.bf16.mxu1 %vm987_vm0, %v3353_v26 }
  0x3e   : > { %v843_v6 = vrot.slane %v3715_v28, 1  ;;  %v844_v7 = vrot.slane %v3729_v35, 1  ;;  %v728_v8 = vsel %vm572_vm1, %v723_v51, %v727_v37  ;;  %v735_v9 = vor.u32 %v734_v52, %v730_v41 }
  0x3f   : > { %781 = vrot.lane.b32.xlu0 %v680_v59, %s3455_s30  ;;  %v1262_v59 = vshll.u32 %v3735_v42, 16  ;;  %v763_v11 = vrot.slane %v761_v54, 1  ;;  %v1260_v12 = vshrl.u32 %v3735_v42, 16  ;;  %v1267_v16 = vshll.u32 %v3344_v56, 16 }
  0x40   : > { %862 = vrot.lane.b32.xlu1 %v824_v63, %s3456_s8  ;;  %v841_v63 = vrot.slane %v3712_v27, 1  ;;  %v747_v20 = vor.u32 %v746_v61, %v742_v48  ;;  %v839_v23 = vsel %vm797_vm2, %v837_v44, %v838_v47  ;;  %v3355_v27 = vld [vmem:[%s4547_s2] ss:$8 sps:$4 sm:$0x3f]   ;;  %v759_v29 = vor.u32 %v758_v4, %v754_v1 }
  0x41   : > { %v1264_v15 = vrot.slane %v1262_v59, 1  ;;  %v574_v37 = vshrl.u32 %v3765_v17, 16  ;;  %v845_v44 = vsel %vm797_vm2, %v843_v6, %v844_v7  ;;  %v1273_v46 = vrot.slane %v3735_v42, 1 }
  0x42   : > { %v752_v30 = vsel %vm572_vm1, %v747_v20, %v751_v2  ;;  %v842_v34 = vsel %vm797_vm2, %v840_v62, %v841_v63  ;;  %v764_v35 = vsel %vm572_vm1, %v759_v29, %v763_v11  ;;  %v1274_v47 = vrot.slane %v3344_v56, 1  ;;  %v3357_v62 = vld [vmem:[%s3720_s16 + $0x14] ss:$0 sps:$4 sm:$0x11]  }
  0x43   : > { %783 = vrot.lane.b32.xlu0 %v692_v14, %s3455_s30  ;;  %v836_v14 = vsel %vm797_vm2, %v834_v38, %v835_v39  ;;  %v1265_v38 = vor.u32 %v1264_v15, %v1260_v12  ;;  %v1269_v39 = vrot.slane %v1267_v16, 1  ;;  %v798_v52 = vrot.slane %v3765_v17, 1 }
  0x44   : > { %864 = vrot.lane.b32.xlu1 %v827_v18, %s3456_s8  ;;  %v740_v18 = vsel %vm572_vm1, %v735_v9, %v739_v53  ;;  %v1275_v51 = vsel %vm797_vm2, %v1273_v46, %v1274_v47  ;;  %v799_v53 = vrot.slane %v3346_v24, 1  ;;  %v1697_v63 = vshll.u32 %v3806_v60, 16 }
  0x45   : > { %v1270_v48 = vsel %vm572_vm1, %v1265_v38, %v1269_v39  ;;  %v1695_v6 = vshrl.u32 %v3806_v60, 16  ;;  %v1708_v15 = vrot.slane %v3806_v60, 1 }
  0x46   : > { %v800_v56 = vsel %vm797_vm2, %v798_v52, %v799_v53  ;;  %v1699_v7 = vrot.slane %v1697_v63, 1 }
  0x47   : > { %785 = vrot.lane.b32.xlu0 %v704_v31, %s3455_s30  ;;  %v576_v31 = vshll.u32 %v3765_v17, 16 }
  0x48   : > { %866 = vrot.lane.b32.xlu1 %v830_v32, %s3456_s8  ;;  %v989_v32 = vsel %vm987_vm0, %v3355_v27, 0  ;;  %v1700_v12 = vor.u32 %v1699_v7, %v1695_v6 }
  0x49   : > { %995 = vmatpush1.bf16.msra.mxu1 %v989_v32  ;;  %v578_v41 = vrot.slane %v576_v31, 1 }
  0x4b   : > { %787 = vrot.lane.b32.xlu0 %v716_v43, %s3455_s30  ;;  %v581_v43 = vshll.u32 %v3346_v24, 16  ;;  %v579_v49 = vor.u32 %v578_v41, %v574_v37 }
  0x4c   : > { %868 = vrot.lane.b32.xlu1 %v833_v57, %s3456_s8  ;;  %v3352_v57 = vld [vmem:[%s4547_s2 + $0x20] ss:$8 sps:$4 sm:$0x3f]  }
  0x4d   : > { %v583_v50 = vrot.slane %v581_v43, 1  ;;  %v1731_v1 = vsel %vm987_vm0, %v3352_v57, 0 }
  0x4f   : > { %789 = vrot.lane.b32.xlu0 %v728_v8, %s3455_s30  ;;  %v584_v54 = vsel %vm572_vm1, %v579_v49, %v583_v50  ;;  %v1702_v8 = vshll.u32 %v3357_v62, 16 }
  0x50   : > { %870 = vrot.lane.b32.xlu1 %v836_v14, %s3456_s8 }
  0x51   : > { %v1704_v14 = vrot.slane %v1702_v8, 1 }
  0x53   : > { %791 = vrot.lane.b32.xlu0 %v740_v18, %s3455_s30  ;;  %v1705_v18 = vsel %vm572_vm1, %v1700_v12, %v1704_v14 }
  0x54   : > { %872 = vrot.lane.b32.xlu1 %v839_v23, %s3456_s8 }
  0x57   : > { %793 = vrot.lane.b32.xlu0 %v752_v30, %s3455_s30 }
  0x58   : > { %874 = vrot.lane.b32.xlu1 %v842_v34, %s3456_s8 }
  0x5b   : > { %795 = vrot.lane.b32.xlu0 %v764_v35, %s3455_s30 }
  0x5c   : > { %876 = vrot.lane.b32.xlu1 %v845_v44, %s3456_s8 }
  0x5f   : > { %1271 = vrot.lane.b32.xlu0 %v1270_v48, %s3455_s30 }
  0x60   : > { %1276 = vrot.lane.b32.xlu1 %v1275_v51, %s3456_s8 }
  0x63   : > { %765 = vrot.lane.b32.xlu0 %v584_v54, %s3455_s30 }
  0x64   : > { %846 = vrot.lane.b32.xlu1 %v800_v56, %s3456_s8 }
  0x67   : > { %1706 = vrot.lane.b32.xlu0 %v1705_v18, %s3455_s30  ;;  %v3359_v18 = vld [vmem:[%s4550_s5] sm:$0xff]   ;;  %s349_s30 = sand.u32 1, %s3436_s25  }
  0x68   : > { %s2886_s12 = sshll.u32 %s349_s30, 8  ;;  %s4498_s27 = scalar_lea.sflag [#allocation4], %s349_s30 }
  0x69   : > { %s4422_s17 = scalar_lea.vmem [#allocation3], %s2886_s12  ;;  %s3378_s12 = sshll.u32 %s3457_s10, 4  ;;  %s3379_s12 = int_to_ptr.vmem [resolvable:$false] %s3378_s12 }
  0x6a   : > { %s2778_s19 = sshll.u32 %s4422_s17, 4  ;;  %s3380_s15 = scalar_lea.vmem %s3379_s12, 8192  ;;  %s4493_s19 = int_to_ptr.vmem [resolvable:$true] %s2778_s19 }
  0x6b   : > { %s3374_s23 = scalar_lea.vmem %s4493_s19, 4096  ;;  %p3381_p1 = scmp.lt.s32.totalorder %s4493_s19, %s3379_s12 }
  0x6c   : > { %p3375_p12 = scmp.ne.s32.totalorder %s4493_s19, %s3374_s23  ;;  %p3382_p2 = scmp.lt.s32.totalorder %s3380_s15, %s3374_s23 }
  0x6e   : > { %p3376_p13 = pnand %p3375_p12, %p3539_p4  ;;  %p3383_p3 = por %p3382_p2, %p3381_p1 }
  0x70   : > { %p3377_p0 = pneg %p3376_p13 }
  0x72   : > { %p3384_p5 = pnand %p3383_p3, %p3377_p0 }
  0x95   : > { %v768_v59 = vpop.permute.xlu0 %767 }
  0x96   : > { %v770_v61 = vpop.permute.xlu1 %769  ;;  %v882_v2 = vsel %vm878_vm3, %v3575_v3, %v768_v59  ;;  %v1709_v3 = vrot.slane %v3357_v62, 1 }
  0x97   : > { %v884_v24 = vsel %vm878_vm3, %v3579_v5, %v770_v61 }
  0x98   : > { %v1710_v23 = vsel %vm797_vm2, %v1708_v15, %v1709_v3 }
  0x99   : > { %v849_v4 = vpop.permute.xlu0 %848  ;;  %1711 = vrot.lane.b32.xlu1 %v1710_v23, %s3456_s8 }
  0x9a   : > { %v3815_v9 = vsel %vm911_vm4, %v882_v2, %v849_v4  ;;  %v851_v11 = vpop.permute.xlu1 %850 }
  0x9b   : > { %2947 = vmatmul.mubr.msk.bf16.vlgmr.msra.gmra.mrb[0].mxu0 %vm954_vm5, %v3815_v9  ;;  %v3828_v27 = vsel %vm911_vm4, %v884_v24, %v851_v11  ;;  %v3360_v24 = vld [vmem:[%s4550_s5 + $0x48] sm:$0xff]  }
  0x9c   : > { %1737 = vmatpush1.bf16.msra.mxu0 %v1731_v1  ;;  %1343 = vmatprep.mubr.bf16.mxu0 %v3454_v10 }
  0x9d   : > { %v772_v16 = vpop.permute.xlu0 %771 }
  0x9e   : > { %v853_v20 = vpop.permute.xlu1 %852  ;;  %v886_v30 = vsel %vm878_vm3, %v3591_v21, %v772_v16 }
  0x9f   : > { %v3836_v34 = vsel %vm911_vm4, %v886_v30, %v853_v20  ;;  %v3362_v30 = vld [vmem:[%s4550_s5 + $0x50] sm:$0xff]  }
  0xa1   : > { %v774_v26 = vpop.permute.xlu0 %773 }
  0xa2   : > { %v855_v29 = vpop.permute.xlu1 %854  ;;  %v888_v37 = vsel %vm878_vm3, %v3594_v22, %v774_v26  ;;  %v3361_v26 = vld [vmem:[%s4550_s5 + $0x8] sm:$0xff]  }
  0xa3   : > { %2948 = vmatmul.mubr.msk.bf16.gmra.mrb[4].mxu0 %vm954_vm5, %v3828_v27  ;;  %v3844_v41 = vsel %vm911_vm4, %v888_v37, %v855_v29  ;;  %v3370_v37 = vld [vmem:[%s4550_s5 + $0x70] sm:$0xff]  }
  0xa4   : > { %1353 = vmatprep.mubr.bf16.mxu0 %v3454_v10 }
  0xa5   : > { %v776_v31 = vpop.permute.xlu0 %775 }
  0xa6   : > { %v857_v32 = vpop.permute.xlu1 %856  ;;  %v890_v44 = vsel %vm878_vm3, %v3606_v36, %v776_v31  ;;  %v3364_v31 = vld [vmem:[%s4550_s5 + $0x58] sm:$0xff]  }
  0xa7   : > { %v3852_v48 = vsel %vm911_vm4, %v890_v44, %v857_v32  ;;  %v3365_v32 = vld [vmem:[%s4550_s5 + $0x18] sm:$0xff]  }
  0xa9   : > { %v778_v5 = vpop.permute.xlu0 %777 }
  0xaa   : > { %v859_v35 = vpop.permute.xlu1 %858  ;;  %v892_v50 = vsel %vm878_vm3, %v3613_v45, %v778_v5  ;;  %v3368_v5 = vld [vmem:[%s4550_s5 + $0x68] sm:$0xff]  }
  0xab   : > { %2949 = vmatmul.mubr.msk.bf16.gmra.mrb[8].mxu0 %vm954_vm5, %v3836_v34  ;;  %v3860_v53 = vsel %vm911_vm4, %v892_v50, %v859_v35  ;;  %v3369_v35 = vld [vmem:[%s4550_s5 + $0x28] sm:$0xff]  }
  0xac   : > { %1363 = vmatprep.mubr.bf16.mxu0 %v3454_v10 }
  0xad   : > { %v780_v38 = vpop.permute.xlu0 %779 }
  0xae   : > { %v861_v39 = vpop.permute.xlu1 %860  ;;  %v894_v56 = vsel %vm878_vm3, %v3623_v55, %v780_v38  ;;  %v3371_v38 = vld [vmem:[%s4550_s5 + $0x30] sm:$0xff]  }
  0xaf   : > { %v3868_v61 = vsel %vm911_vm4, %v894_v56, %v861_v39  ;;  %v3372_v39 = vld [vmem:[%s4550_s5 + $0x78] sm:$0xff]  }
  0xb1   : > { %v782_v21 = vpop.permute.xlu0 %781 }
  0xb2   : > { %v863_v43 = vpop.permute.xlu1 %862  ;;  %v896_v63 = vsel %vm878_vm3, %v3631_v0, %v782_v21 }
  0xb3   : > { %2950 = vmatmul.mubr.msk.bf16.gmra.mrb[12].mxu0 %vm954_vm5, %v3844_v41  ;;  %v3876_v4 = vsel %vm911_vm4, %v896_v63, %v863_v43 }
  0xb4   : > { %1373 = vmatprep.mubr.bf16.mxu0 %v3454_v10 }
  0xb5   : > { %v784_v46 = vpop.permute.xlu0 %783 }
  0xb6   : > { %v865_v47 = vpop.permute.xlu1 %864  ;;  %v898_v7 = vsel %vm878_vm3, %v3646_v19, %v784_v46 }
  0xb7   : > { %v3887_v14 = vsel %vm911_vm4, %v898_v7, %v865_v47 }
  0xb9   : > { %v786_v22 = vpop.permute.xlu0 %785 }
  0xba   : > { %v867_v49 = vpop.permute.xlu1 %866  ;;  %v900_v19 = vsel %vm878_vm3, %v3657_v33, %v786_v22 }
  0xbb   : > { %2951 = vmatmul.mubr.msk.bf16.gmra.mrb[16].mxu0 %vm954_vm5, %v3852_v48 }
  0xbc   : > { %1383 = vmatprep.mubr.bf16.mxu0 %v3454_v10 }
  0xbd   : > { %v788_v51 = vpop.permute.xlu0 %787 }
  0xbe   : > { %v869_v52 = vpop.permute.xlu1 %868  ;;  %v902_v15 = vsel %vm878_vm3, %v3663_v40, %v788_v51 }
  0xbf   : > { %v3908_v3 = vsel %vm911_vm4, %v902_v15, %v869_v52 }
  0xc1   : > { %v790_v36 = vpop.permute.xlu0 %789 }
  0xc2   : > { %v871_v54 = vpop.permute.xlu1 %870  ;;  %v904_v33 = vsel %vm878_vm3, %v3680_v58, %v790_v36  ;;  %v3358_v58 = vld [vmem:[%s4550_s5 + $0x40] sm:$0xff]  }
  0xc3   : > { %2952 = vmatmul.mubr.msk.bf16.gmra.mrb[20].mxu0 %vm954_vm5, %v3860_v53  ;;  %3011 = vmatprep.subr.bf16.mxu1 %v3358_v58 }
  0xc4   : > { %1393 = vmatprep.mubr.bf16.mxu0 %v3454_v10 }
  0xc5   : > { %v792_v57 = vpop.permute.xlu0 %791 }
  0xc6   : > { %v873_v59 = vpop.permute.xlu1 %872  ;;  %v906_v40 = vsel %vm878_vm3, %v3695_v13, %v792_v57 }
  0xc7   : > { %v3930_v16 = vsel %vm911_vm4, %v906_v40, %v873_v59 }
  0xc9   : > { %v794_v45 = vpop.permute.xlu0 %793 }
  0xca   : > { %v875_v62 = vpop.permute.xlu1 %874  ;;  %v908_v13 = vsel %vm878_vm3, %v3709_v25, %v794_v45 }
  0xcb   : > { %2953 = vmatmul.mubr.msk.bf16.gmra.mrb[24].mxu0 %vm954_vm5, %v3868_v61  ;;  %v3947_v20 = vsel %vm911_vm4, %v908_v13, %v875_v62 }
  0xcc   : > { %1403 = vmatprep.mubr.bf16.mxu0 %v3454_v10 }
  0xcd   : > { %v796_v1 = vpop.permute.xlu0 %795 }
  0xce   : > { %v877_v2 = vpop.permute.xlu1 %876  ;;  %v910_v23 = vsel %vm878_vm3, %v3715_v28, %v796_v1 }
  0xcf   : > { %v3958_v25 = vsel %vm911_vm4, %v910_v23, %v877_v2 }
  0xd1   : > { %v1272_v55 = vpop.permute.xlu0 %1271 }
  0xd2   : > { %v1277_v6 = vpop.permute.xlu1 %1276  ;;  %v1279_v28 = vsel %vm878_vm3, %v3735_v42, %v1272_v55  ;;  %v3363_v42 = vld [vmem:[%s4550_s5 + $0x10] sm:$0xff]  }
  0xd3   : > { %2954 = vmatmul.mubr.msk.bf16.gmra.mrb[28].mxu0 %vm954_vm5, %v3876_v4  ;;  %v3975_v29 = vsel %vm911_vm4, %v1279_v28, %v1277_v6 }
  0xd4   : > { %1413 = vmatprep.mubr.bf16.mxu0 %v3454_v10 }
  0xd5   : > { %v766_v8 = vpop.permute.xlu0 %765 }
  0xd6   : > { %v880_v11 = vsel %vm878_vm3, %v3765_v17, %v766_v8  ;;  %v847_v0 = vpop.permute.xlu1 %846  ;;  %v3897_v17 = vsel %vm911_vm4, %v900_v19, %v867_v49 }
  0xd7   : > { %v913_v12 = vsel %vm911_vm4, %v880_v11, %v847_v0 }
  0xd8   : > { %2924 = vmatmul.mubr.msk.bf16.vlgmr.msra.gmra.mrb[0].mxu1 %vm954_vm5, %v913_v12  ;;  %v2187_v12 = vlaneseq }
  0xd9   : > { %1036 = vmatprep.mubr.bf16.mxu1 %v3454_v10  ;;  %3012 = vmatpush3.bf16.msra.mxu1 %v3359_v18  ;;  %v1707_v21 = vpop.permute.xlu0 %1706  ;;  %v2261_v18 = vld [vmem:[%s4549_s4] sm:$0x3] }
  0xda   : > { %3013 = vmatprep.subr.bf16.mxu1 %v3360_v24  ;;  %v1714_v43 = vsel %vm878_vm3, %v3806_v60, %v1707_v21  ;;  %v2188_v15 = vshrl.u32 %v2187_v12, 7 }
  0xdb   : > { %2955 = vmatmul.mubr.msk.bf16.gmra.mrb[32].mxu0 %vm954_vm5, %v3887_v14 }
  0xdc   : > { %1423 = vmatprep.mubr.bf16.mxu0 %v3454_v10  ;;  %v2193_v40 = vsub.s32 1, %v2188_v15 }
  0xdd   : > { %3014 = vmatpush3.bf16.msra.mxu1 %v3361_v26 }
  0xde   : > { %3015 = vmatprep.subr.bf16.mxu1 %v3362_v30 }
  0xe0   : > { %2925 = vmatmul.mubr.msk.bf16.gmra.mrb[4].mxu1 %vm954_vm5, %v3815_v9  ;;  %v3919_v9 = vsel %vm911_vm4, %v904_v33, %v871_v54  ;;  %v2189_v33 = vsub.s32 0, %v2188_v15 }
  0xe1   : > { %1046 = vmatprep.mubr.bf16.mxu1 %v3454_v10  ;;  %3016 = vmatpush3.bf16.msra.mxu1 %v3363_v42  ;;  %v4167_v42 = vrot.slane %v2261_v18, %v2193_v40 }
  0xe2   : > { %3017 = vmatprep.subr.bf16.mxu1 %v3364_v31  ;;  %v4165_v28 = vrot.slane %v2261_v18, %v2189_v33 }
  0xe3   : > { %2956 = vmatmul.mubr.msk.bf16.gmra.mrb[36].mxu0 %vm954_vm5, %v3897_v17 }
  0xe4   : > { %1433 = vmatprep.mubr.bf16.mxu0 %v3454_v10 }
  0xe5   : > { %3018 = vmatpush3.bf16.msra.mxu1 %v3365_v32 }
  0xe8   : > { %2926 = vmatmul.mubr.msk.bf16.gmra.mrb[8].mxu1 %vm954_vm5, %v3828_v27 }
  0xe9   : > { %1056 = vmatprep.mubr.bf16.mxu1 %v3454_v10 }
  0xeb   : > { %2957 = vmatmul.mubr.msk.bf16.gmra.mrb[40].mxu0 %vm954_vm5, %v3908_v3 }
  0xec   : > { %1443 = vmatprep.mubr.bf16.mxu0 %v3454_v10 }
  0xf0   : > { %2927 = vmatmul.mubr.msk.bf16.gmra.mrb[12].mxu1 %vm954_vm5, %v3836_v34 }
  0xf1   : > { %1066 = vmatprep.mubr.bf16.mxu1 %v3454_v10 }
  0xf3   : > { %2958 = vmatmul.mubr.msk.bf16.gmra.mrb[44].mxu0 %vm954_vm5, %v3919_v9 }
  0xf4   : > { %1453 = vmatprep.mubr.bf16.mxu0 %v3454_v10 }
  0xf8   : > { %2928 = vmatmul.mubr.msk.bf16.gmra.mrb[16].mxu1 %vm954_vm5, %v3844_v41 }
  0xf9   : > { %1076 = vmatprep.mubr.bf16.mxu1 %v3454_v10 }
  0xfb   : > { %2959 = vmatmul.mubr.msk.bf16.gmra.mrb[48].mxu0 %vm954_vm5, %v3930_v16 }
  0xfc   : > { %1463 = vmatprep.mubr.bf16.mxu0 %v3454_v10 }
 0x100   : > { %2929 = vmatmul.mubr.msk.bf16.gmra.mrb[20].mxu1 %vm954_vm5, %v3852_v48 }
 0x101   : > { %1086 = vmatprep.mubr.bf16.mxu1 %v3454_v10 }
 0x103   : > { %2960 = vmatmul.mubr.msk.bf16.gmra.mrb[52].mxu0 %vm954_vm5, %v3947_v20 }
 0x104   : > { %1473 = vmatprep.mubr.bf16.mxu0 %v3454_v10 }
 0x108   : > { %2930 = vmatmul.mubr.msk.bf16.gmra.mrb[24].mxu1 %vm954_vm5, %v3860_v53 }
 0x109   : > { %1096 = vmatprep.mubr.bf16.mxu1 %v3454_v10 }
 0x10b   : > { %2961 = vmatmul.mubr.msk.bf16.gmra.mrb[56].mxu0 %vm954_vm5, %v3958_v25  ;;  %v1712_v44 = vpop.permute.xlu1 %1711 }
 0x10c   : > { %1483 = vmatprep.mubr.bf16.mxu0 %v3454_v10  ;;  %v1716_v46 = vsel %vm911_vm4, %v1714_v43, %v1712_v44 }
 0x110   : > { %2931 = vmatmul.mubr.msk.bf16.gmra.mrb[28].mxu1 %vm954_vm5, %v3868_v61 }
 0x111   : > { %1106 = vmatprep.mubr.bf16.mxu1 %v3454_v10 }
 0x113   : > { %2962 = vmatmul.mubr.msk.bf16.gmra.mrb[60].mxu0 %vm954_vm5, %v3975_v29 }
 0x114   : > { %1768 = vmatprep.mubr.bf16.mxu0 %v3454_v10 }
 0x118   : > { %2932 = vmatmul.mubr.msk.bf16.gmra.mrb[32].mxu1 %vm954_vm5, %v3876_v4 }
 0x119   : > { %1116 = vmatprep.mubr.bf16.mxu1 %v3454_v10 }
 0x11b   : > { %2970 = vmatmul.mubr.msk.bf16.vlgmr.msra.gmra.mrb[0].mxu0 %vm954_vm5, %v3828_v27  ;;  %v3366_v27 = vld [vmem:[%s4550_s5 + $0x60] sm:$0xff]  }
 0x11c   : > { %1778 = vmatprep.mubr.bf16.mxu0 %v3454_v10  ;;  %3019 = vmatprep.subr.bf16.mxu1 %v3366_v27 }
 0x120   : > { %2933 = vmatmul.mubr.msk.bf16.gmra.mrb[36].mxu1 %vm954_vm5, %v3887_v14 }
 0x121   : > { %1126 = vmatprep.mubr.bf16.mxu1 %v3454_v10 }
 0x123   : > { %2971 = vmatmul.mubr.msk.bf16.gmra.mrb[4].mxu0 %vm954_vm5, %v3836_v34  ;;  %v3367_v34 = vld [vmem:[%s4550_s5 + $0x20] sm:$0xff]  }
 0x124   : > { %1788 = vmatprep.mubr.bf16.mxu0 %v3454_v10  ;;  %3020 = vmatpush3.bf16.msra.mxu1 %v3367_v34 }
 0x125   : > { %3021 = vmatprep.subr.bf16.mxu1 %v3368_v5 }
 0x128   : > { %2934 = vmatmul.mubr.msk.bf16.gmra.mrb[40].mxu1 %vm954_vm5, %v3897_v17 }
 0x129   : > { %1136 = vmatprep.mubr.bf16.mxu1 %v3454_v10  ;;  %3022 = vmatpush3.bf16.msra.mxu1 %v3369_v35 }
 0x12a   : > { %3023 = vmatprep.subr.bf16.mxu1 %v3370_v37 }
 0x12b   : > { %2972 = vmatmul.mubr.msk.bf16.gmra.mrb[8].mxu0 %vm954_vm5, %v3844_v41  ;;  %v3373_v41 = vld [vmem:[%s4550_s5 + $0x38] sm:$0xff]  }
 0x12c   : > { %1798 = vmatprep.mubr.bf16.mxu0 %v3454_v10 }
 0x12d   : > { %3024 = vmatpush3.bf16.msra.mxu1 %v3371_v38 }
 0x12e   : > { %3025 = vmatprep.subr.bf16.mxu1 %v3372_v39 }
 0x130   : > { %2935 = vmatmul.mubr.msk.bf16.gmra.mrb[44].mxu1 %vm954_vm5, %v3908_v3 }
 0x131   : > { %1146 = vmatprep.mubr.bf16.mxu1 %v3454_v10  ;;  %3026 = vmatpush3.bf16.msra.mxu1 %v3373_v41 }
 0x133   : > { %2973 = vmatmul.mubr.msk.bf16.gmra.mrb[12].mxu0 %vm954_vm5, %v3852_v48 }
 0x134   : > { %1808 = vmatprep.mubr.bf16.mxu0 %v3454_v10 }
 0x138   : > { %2936 = vmatmul.mubr.msk.bf16.gmra.mrb[48].mxu1 %vm954_vm5, %v3919_v9 }
 0x139   : > { %1156 = vmatprep.mubr.bf16.mxu1 %v3454_v10 }
 0x13b   : > { %2974 = vmatmul.mubr.msk.bf16.gmra.mrb[16].mxu0 %vm954_vm5, %v3860_v53 }
 0x13c   : > { %1818 = vmatprep.mubr.bf16.mxu0 %v3454_v10 }
 0x140   : > { %2937 = vmatmul.mubr.msk.bf16.gmra.mrb[52].mxu1 %vm954_vm5, %v3930_v16 }
 0x141   : > { %1166 = vmatprep.mubr.bf16.mxu1 %v3454_v10 }
 0x143   : > { %2975 = vmatmul.mubr.msk.bf16.gmra.mrb[20].mxu0 %vm954_vm5, %v3868_v61 }
 0x144   : > { %1828 = vmatprep.mubr.bf16.mxu0 %v3454_v10 }
 0x148   : > { %2938 = vmatmul.mubr.msk.bf16.gmra.mrb[56].mxu1 %vm954_vm5, %v3947_v20 }
 0x149   : > { %1176 = vmatprep.mubr.bf16.mxu1 %v3454_v10 }
 0x14b   : > { %2976 = vmatmul.mubr.msk.bf16.gmra.mrb[24].mxu0 %vm954_vm5, %v3876_v4 }
 0x14c   : > { %1838 = vmatprep.mubr.bf16.mxu0 %v3454_v10 }
 0x150   : > { %2939 = vmatmul.mubr.msk.bf16.gmra.mrb[60].mxu1 %vm954_vm5, %v3958_v25 }
 0x153   : > { %2977 = vmatmul.mubr.msk.bf16.gmra.mrb[28].mxu0 %vm954_vm5, %v3887_v14 }
 0x154   : > { %1848 = vmatprep.mubr.bf16.mxu0 %v3454_v10 }
 0x15b   : > { %2978 = vmatmul.mubr.msk.bf16.gmra.mrb[32].mxu0 %vm954_vm5, %v3897_v17 }
 0x15c   : > { %1858 = vmatprep.mubr.bf16.mxu0 %v3454_v10 }
 0x163   : > { %2979 = vmatmul.mubr.msk.bf16.gmra.mrb[36].mxu0 %vm954_vm5, %v3908_v3 }
 0x164   : > { %1868 = vmatprep.mubr.bf16.mxu0 %v3454_v10 }
 0x16b   : > { %2980 = vmatmul.mubr.msk.bf16.gmra.mrb[40].mxu0 %vm954_vm5, %v3919_v9  ;;  %v2185_v9 = vld [vmem:[%s4548_s3] sm:$0x3] }
 0x16c   : > { %1878 = vmatprep.mubr.bf16.mxu0 %v3454_v10  ;;  %v4163_v24 = vrot.slane %v2185_v9, %v2193_v40 }
 0x173   : > { %2981 = vmatmul.mubr.msk.bf16.gmra.mrb[44].mxu0 %vm954_vm5, %v3930_v16 }
 0x174   : > { %1888 = vmatprep.mubr.bf16.mxu0 %v3454_v10 }
 0x17b   : > { %2982 = vmatmul.mubr.msk.bf16.gmra.mrb[48].mxu0 %vm954_vm5, %v3947_v20  ;;  %v4159_v20 = vrot.slane %v2185_v9, %v2189_v33 }
 0x17c   : > { %1898 = vmatprep.mubr.bf16.mxu0 %v3454_v10 }
 0x183   : > { %2983 = vmatmul.mubr.msk.bf16.gmra.mrb[52].mxu0 %vm954_vm5, %v3958_v25 }
 0x184   : > { %1908 = vmatprep.mubr.bf16.mxu0 %v3454_v10 }
 0x18b   : > { %2984 = vmatmul.mubr.msk.bf16.gmra.mrb[56].mxu0 %vm954_vm5, %v3975_v29 }
 0x18c   : > { %1918 = vmatprep.mubr.bf16.mxu0 %v3454_v10 }
 0x193   : > { %2985 = vmatmul.mubr.msk.bf16.gmra.mrb[60].mxu0 %vm954_vm5, %v1716_v46 }
 0x1ab   : > { %v1028_v47 = vpop.f32.mrb[0].mxu1 }
 0x1ac   : > { %v1030_v48 = vpop.f32.mrb[1].mxu1 }
 0x1ad   : > { %v1032_v22 = vpop.f32.mrb[2].mxu1 }
 0x1ae   : > { %v1034_v49 = vpop.f32.mrb[3].mxu1 }
 0x1b3   : > { %v4091_v50 = vpop.f32.mrb[4].mxu1 }
 0x1b4   : > { %v4093_v51 = vpop.f32.mrb[5].mxu1 }
 0x1b5   : > { %v4095_v52 = vpop.f32.mrb[6].mxu1 }
 0x1b6   : > { %v4097_v53 = vpop.f32.mrb[7].mxu1 }
 0x1bb   : > { %v4099_v10 = vpop.f32.mrb[8].mxu1 }
 0x1bc   : > { %v4101_v60 = vpop.f32.mrb[9].mxu1 }
 0x1bd   : > { %v4103_v36 = vpop.f32.mrb[10].mxu1 }
 0x1be   : > { %v4105_v54 = vpop.f32.mrb[11].mxu1 }
 0x1c3   : > { %v4107_v56 = vpop.f32.mrb[12].mxu1 }
 0x1c4   : > { %v4109_v57 = vpop.f32.mrb[13].mxu1 }
 0x1c5   : > { %v4111_v59 = vpop.f32.mrb[14].mxu1 }
 0x1c6   : > { %v4113_v61 = vpop.f32.mrb[15].mxu1 }
 0x1cb   : > { %v4115_v45 = vpop.f32.mrb[16].mxu1 }
 0x1cc   : > { %v4117_v62 = vpop.f32.mrb[17].mxu1 }
 0x1cd   : > { %v4119_v63 = vpop.f32.mrb[18].mxu1 }
 0x1ce   : > { %v4121_v1 = vpop.f32.mrb[19].mxu1 }
 0x1d3   : > { %v4123_v2 = vpop.f32.mrb[20].mxu1 }
 0x1d4   : > { %v4125_v4 = vpop.f32.mrb[21].mxu1 }
 0x1d5   : > { %v4127_v55 = vpop.f32.mrb[22].mxu1 }
 0x1d6   : > { %v4129_v6 = vpop.f32.mrb[23].mxu1 }
 0x1db   : > { %v4131_v7 = vpop.f32.mrb[24].mxu1 }
 0x1dc   : > { %v4133_v8 = vpop.f32.mrb[25].mxu1 }
 0x1dd   : > { %v4135_v11 = vpop.f32.mrb[26].mxu1 }
 0x1de   : > { %v4137_v0 = vpop.f32.mrb[27].mxu1 }
 0x1e3   : > { %v4139_v14 = vpop.f32.mrb[28].mxu1 }
 0x1e4   : > { %v4141_v19 = vpop.f32.mrb[29].mxu1 }
 0x1e5   : > { %v4143_v17 = vpop.f32.mrb[30].mxu1 }
 0x1e6   : > { %v4145_v3 = vpop.f32.mrb[31].mxu1 }
 0x1eb   : > { %v4150_v16 = vpop.f32.mrb[32].mxu1 }
 0x1ec   : > { %v4152_v58 = vpop.f32.mrb[33].mxu1 }
 0x1ed   : > { %v4157_v13 = vpop.f32.mrb[34].mxu1 }
 0x1ee   : > { %v4161_v23 = vpop.f32.mrb[35].mxu1  ;;  %v1770_v25 = vpop.f32.mrb[0].mxu0 }
 0x1ef   : > { %v3123_v26 = vadd.f32 %v1770_v25, %v1028_v47  ;;  %v1772_v29 = vpop.f32.mrb[1].mxu0 }
 0x1f0   : > { %v3124_v30 = vadd.f32 %v1772_v29, %v1030_v48  ;;  %v1774_v31 = vpop.f32.mrb[2].mxu0 }
 0x1f1   : > { %v2197_v32 = vmul.f32 %v3123_v26, %v4159_v20  ;;  %v3125_v27 = vadd.f32 %v1774_v31, %v1032_v22  ;;  %v1776_v34 = vpop.f32.mrb[3].mxu0 }
 0x1f2   : > { %v2198_v5 = vmul.f32 %v3124_v30, %v4163_v24  ;;  %v3126_v35 = vadd.f32 %v1776_v34, %v1034_v49 }
 0x1f3   : > { %v2273_v37 = vadd.f32 %v4165_v28, %v2197_v32  ;;  %v2199_v38 = vmul.f32 %v3125_v27, %v4159_v20  ;;  %v4173_v39 = vpop.f32.mrb[36].mxu1 }
 0x1f4   : > { %v2274_v41 = vadd.f32 %v4167_v42, %v2198_v5  ;;  %v2200_v21 = vmul.f32 %v3126_v35, %v4163_v24  ;;  %v4177_v43 = vpop.f32.mrb[37].mxu1 }
 0x1f5   : > { %v2275_v44 = vadd.f32 %v4165_v28, %v2199_v38  ;;  %v4180_v46 = vpop.f32.mrb[38].mxu1  ;;  %v2337_v49 = vmax.f32 %v2273_v37, 0.0 }
 0x1f6   : > { %v2276_v47 = vadd.f32 %v4167_v42, %v2200_v21  ;;  %v4183_v48 = vpop.f32.mrb[39].mxu1  ;;  %v1780_v22 = vpop.f32.mrb[4].mxu0  ;;  %v2338_v9 = vmax.f32 %v2274_v41, 0.0 }
 0x1f7   : > { %v2339_v12 = vmax.f32 %v2275_v44, 0.0  ;;  %v3127_v15 = vadd.f32 %v1780_v22, %v4091_v50  ;;  %v1782_v33 = vpop.f32.mrb[5].mxu0 }
 0x1f8   : > { %v2340_v40 = vmax.f32 %v2276_v47, 0.0  ;;  %v3128_v18 = vadd.f32 %v1782_v33, %v4093_v51  ;;  %v1784_v25 = vpop.f32.mrb[6].mxu0 }
 0x1f9   : > { %v2401_v26 = vpack.c.bf16 %v2339_v12, %v2337_v49  ;;  %v2201_v29 = vmul.f32 %v3127_v15, %v4159_v20  ;;  %v3129_v30 = vadd.f32 %v1784_v25, %v4095_v52  ;;  %v1786_v31 = vpop.f32.mrb[7].mxu0 }
 0x1fa   : > { %v2202_v32 = vmul.f32 %v3128_v18, %v4163_v24  ;;  %v3130_v27 = vadd.f32 %v1786_v31, %v4097_v53  ;;  %v2402_v34 = vpack.c.bf16 %v2340_v40, %v2338_v9 }
 0x1fb   : > { %v2277_v5 = vadd.f32 %v4165_v28, %v2201_v29  ;;  %v2203_v50 = vmul.f32 %v3129_v30, %v4159_v20  ;;  %v4193_v35 = vpop.f32.mrb[40].mxu1 }
 0x1fc   : > { %v2278_v51 = vadd.f32 %v4167_v42, %v2202_v32  ;;  %v2204_v37 = vmul.f32 %v3130_v27, %v4163_v24  ;;  %v4197_v38 = vpop.f32.mrb[41].mxu1  ;;  %2600 = vmatprep.mubr.bf16.mxu1 %v2402_v34 }
 0x1fd   : > { %v2279_v52 = vadd.f32 %v4165_v28, %v2203_v50  ;;  %v4200_v41 = vpop.f32.mrb[42].mxu1  ;;  %2601 = vmatmul.mubr.bf16.vlgmr.msra.gmra.mrb[64].mxu1 %v2401_v26  ;;  %v2341_v47 = vmax.f32 %v2277_v5, 0.0 }
 0x1fe   : > { %v2280_v53 = vadd.f32 %v4167_v42, %v2204_v37  ;;  %v4203_v21 = vpop.f32.mrb[43].mxu1  ;;  %v1790_v44 = vpop.f32.mrb[8].mxu0  ;;  %v2342_v15 = vmax.f32 %v2278_v51, 0.0 }
 0x1ff   : > { %v2343_v22 = vmax.f32 %v2279_v52, 0.0  ;;  %v3131_v49 = vadd.f32 %v1790_v44, %v4099_v10  ;;  %v1792_v12 = vpop.f32.mrb[9].mxu0 }
 0x200   : > { %v2344_v33 = vmax.f32 %v2280_v53, 0.0  ;;  %v3132_v9 = vadd.f32 %v1792_v12, %v4101_v60  ;;  %v1794_v40 = vpop.f32.mrb[10].mxu0 }
 0x201   : > { %v2205_v18 = vmul.f32 %v3131_v49, %v4159_v20  ;;  %v3133_v25 = vadd.f32 %v1794_v40, %v4103_v36  ;;  %v1796_v26 = vpop.f32.mrb[11].mxu0  ;;  %v2403_v29 = vpack.c.bf16 %v2343_v22, %v2341_v47 }
 0x202   : > { %v2206_v30 = vmul.f32 %v3132_v9, %v4163_v24  ;;  %v3134_v31 = vadd.f32 %v1796_v26, %v4105_v54  ;;  %v2404_v32 = vpack.c.bf16 %v2344_v33, %v2342_v15 }
 0x203   : > { %v2281_v27 = vadd.f32 %v4165_v28, %v2205_v18  ;;  %v2207_v10 = vmul.f32 %v3133_v25, %v4159_v20  ;;  %v4213_v34 = vpop.f32.mrb[44].mxu1 }
 0x204   : > { %v2282_v60 = vadd.f32 %v4167_v42, %v2206_v30  ;;  %v2208_v5 = vmul.f32 %v3134_v31, %v4163_v24  ;;  %v4217_v50 = vpop.f32.mrb[45].mxu1  ;;  %2608 = vmatprep.mubr.bf16.mxu1 %v2404_v32 }
 0x205   : > { %v2283_v36 = vadd.f32 %v4165_v28, %v2207_v10  ;;  %v4220_v51 = vpop.f32.mrb[46].mxu1  ;;  %2609 = vmatmul.mubr.bf16.gmra.mrb[68].mxu1 %v2403_v29  ;;  %v2345_v53 = vmax.f32 %v2281_v27, 0.0 }
 0x206   : > { %v2284_v54 = vadd.f32 %v4167_v42, %v2208_v5  ;;  %v4223_v37 = vpop.f32.mrb[47].mxu1  ;;  %v1800_v52 = vpop.f32.mrb[12].mxu0  ;;  %v2346_v49 = vmax.f32 %v2282_v60, 0.0 }
 0x207   : > { %v2347_v44 = vmax.f32 %v2283_v36, 0.0  ;;  %v3135_v47 = vadd.f32 %v1800_v52, %v4107_v56  ;;  %v1802_v22 = vpop.f32.mrb[13].mxu0 }
 0x208   : > { %v2348_v12 = vmax.f32 %v2284_v54, 0.0  ;;  %v3136_v15 = vadd.f32 %v1802_v22, %v4109_v57  ;;  %v1804_v33 = vpop.f32.mrb[14].mxu0 }
 0x209   : > { %v2209_v9 = vmul.f32 %v3135_v47, %v4159_v20  ;;  %v3137_v40 = vadd.f32 %v1804_v33, %v4111_v59  ;;  %v1806_v18 = vpop.f32.mrb[15].mxu0  ;;  %v2405_v25 = vpack.c.bf16 %v2347_v44, %v2345_v53 }
 0x20a   : > { %v2210_v26 = vmul.f32 %v3136_v15, %v4163_v24  ;;  %v3138_v29 = vadd.f32 %v1806_v18, %v4113_v61  ;;  %v2406_v30 = vpack.c.bf16 %v2348_v12, %v2346_v49 }
 0x20b   : > { %v2285_v31 = vadd.f32 %v4165_v28, %v2209_v9  ;;  %v2211_v56 = vmul.f32 %v3137_v40, %v4159_v20  ;;  %v4233_v32 = vpop.f32.mrb[48].mxu1 }
 0x20c   : > { %v2286_v57 = vadd.f32 %v4167_v42, %v2210_v26  ;;  %v2212_v27 = vmul.f32 %v3138_v29, %v4163_v24  ;;  %v4237_v10 = vpop.f32.mrb[49].mxu1  ;;  %2616 = vmatprep.mubr.bf16.mxu1 %v2406_v30 }
 0x20d   : > { %v2287_v59 = vadd.f32 %v4165_v28, %v2211_v56  ;;  %v4240_v60 = vpop.f32.mrb[50].mxu1  ;;  %2617 = vmatmul.mubr.bf16.gmra.mrb[72].mxu1 %v2405_v25  ;;  %v2349_v54 = vmax.f32 %v2285_v31, 0.0 }
 0x20e   : > { %v2288_v61 = vadd.f32 %v4167_v42, %v2212_v27  ;;  %v4243_v5 = vpop.f32.mrb[51].mxu1  ;;  %v1810_v36 = vpop.f32.mrb[16].mxu0  ;;  %v2350_v47 = vmax.f32 %v2286_v57, 0.0 }
 0x20f   : > { %v2351_v52 = vmax.f32 %v2287_v59, 0.0  ;;  %v3139_v53 = vadd.f32 %v1810_v36, %v4115_v45  ;;  %v1812_v44 = vpop.f32.mrb[17].mxu0 }
 0x210   : > { %v2352_v22 = vmax.f32 %v2288_v61, 0.0  ;;  %v3140_v49 = vadd.f32 %v1812_v44, %v4117_v62  ;;  %v1814_v12 = vpop.f32.mrb[18].mxu0 }
 0x211   : > { %v2213_v15 = vmul.f32 %v3139_v53, %v4159_v20  ;;  %v3141_v33 = vadd.f32 %v1814_v12, %v4119_v63  ;;  %v1816_v9 = vpop.f32.mrb[19].mxu0  ;;  %v2407_v40 = vpack.c.bf16 %v2351_v52, %v2349_v54 }
 0x212   : > { %v2214_v18 = vmul.f32 %v3140_v49, %v4163_v24  ;;  %v3142_v25 = vadd.f32 %v1816_v9, %v4121_v1  ;;  %v2408_v26 = vpack.c.bf16 %v2352_v22, %v2350_v47 }
 0x213   : > { %v2289_v29 = vadd.f32 %v4165_v28, %v2213_v15  ;;  %v2215_v45 = vmul.f32 %v3141_v33, %v4159_v20  ;;  %v4253_v30 = vpop.f32.mrb[52].mxu1 }
 0x214   : > { %v2290_v62 = vadd.f32 %v4167_v42, %v2214_v18  ;;  %v2216_v31 = vmul.f32 %v3142_v25, %v4163_v24  ;;  %v4257_v56 = vpop.f32.mrb[53].mxu1  ;;  %2624 = vmatprep.mubr.bf16.mxu1 %v2408_v26 }
 0x215   : > { %v2291_v63 = vadd.f32 %v4165_v28, %v2215_v45  ;;  %v4260_v57 = vpop.f32.mrb[54].mxu1  ;;  %2625 = vmatmul.mubr.bf16.gmra.mrb[76].mxu1 %v2407_v40  ;;  %v2353_v61 = vmax.f32 %v2289_v29, 0.0 }
 0x216   : > { %v2292_v1 = vadd.f32 %v4167_v42, %v2216_v31  ;;  %v4263_v27 = vpop.f32.mrb[55].mxu1  ;;  %v1820_v59 = vpop.f32.mrb[20].mxu0  ;;  %v2354_v53 = vmax.f32 %v2290_v62, 0.0 }
 0x217   : > { %v2355_v36 = vmax.f32 %v2291_v63, 0.0  ;;  %v3143_v54 = vadd.f32 %v1820_v59, %v4123_v2  ;;  %v1822_v52 = vpop.f32.mrb[21].mxu0 }
 0x218   : > { %v2356_v44 = vmax.f32 %v2292_v1, 0.0  ;;  %v3144_v47 = vadd.f32 %v1822_v52, %v4125_v4  ;;  %v1824_v22 = vpop.f32.mrb[22].mxu0 }
 0x219   : > { %v2217_v49 = vmul.f32 %v3143_v54, %v4159_v20  ;;  %v3145_v12 = vadd.f32 %v1824_v22, %v4127_v55  ;;  %v1826_v15 = vpop.f32.mrb[23].mxu0  ;;  %v2409_v33 = vpack.c.bf16 %v2355_v36, %v2353_v61 }
 0x21a   : > { %v2218_v9 = vmul.f32 %v3144_v47, %v4163_v24  ;;  %v3146_v40 = vadd.f32 %v1826_v15, %v4129_v6  ;;  %v2410_v18 = vpack.c.bf16 %v2356_v44, %v2354_v53 }
 0x21b   : > { %v2293_v25 = vadd.f32 %v4165_v28, %v2217_v49  ;;  %v2219_v2 = vmul.f32 %v3145_v12, %v4159_v20  ;;  %v4273_v26 = vpop.f32.mrb[56].mxu1 }
 0x21c   : > { %v2294_v4 = vadd.f32 %v4167_v42, %v2218_v9  ;;  %v2220_v29 = vmul.f32 %v3146_v40, %v4163_v24  ;;  %v4277_v45 = vpop.f32.mrb[57].mxu1  ;;  %2632 = vmatprep.mubr.bf16.mxu1 %v2410_v18 }
 0x21d   : > { %v2295_v55 = vadd.f32 %v4165_v28, %v2219_v2  ;;  %v4280_v62 = vpop.f32.mrb[58].mxu1  ;;  %2633 = vmatmul.mubr.bf16.gmra.mrb[80].mxu1 %v2409_v33  ;;  %v2357_v1 = vmax.f32 %v2293_v25, 0.0 }
 0x21e   : > { %v2296_v6 = vadd.f32 %v4167_v42, %v2220_v29  ;;  %v4283_v31 = vpop.f32.mrb[59].mxu1  ;;  %v1830_v63 = vpop.f32.mrb[24].mxu0  ;;  %v2358_v54 = vmax.f32 %v2294_v4, 0.0 }
 0x21f   : > { %v2359_v59 = vmax.f32 %v2295_v55, 0.0  ;;  %v3147_v61 = vadd.f32 %v1830_v63, %v4131_v7  ;;  %v1832_v36 = vpop.f32.mrb[25].mxu0 }
 0x220   : > { %v2360_v52 = vmax.f32 %v2296_v6, 0.0  ;;  %v3148_v53 = vadd.f32 %v1832_v36, %v4133_v8  ;;  %v1834_v44 = vpop.f32.mrb[26].mxu0 }
 0x221   : > { %v2221_v47 = vmul.f32 %v3147_v61, %v4159_v20  ;;  %v3149_v22 = vadd.f32 %v1834_v44, %v4135_v11  ;;  %v1836_v49 = vpop.f32.mrb[27].mxu0  ;;  %v2411_v12 = vpack.c.bf16 %v2359_v59, %v2357_v1 }
 0x222   : > { %v2222_v15 = vmul.f32 %v3148_v53, %v4163_v24  ;;  %v3150_v33 = vadd.f32 %v1836_v49, %v4137_v0  ;;  %v2412_v9 = vpack.c.bf16 %v2360_v52, %v2358_v54 }
 0x223   : > { %v2297_v40 = vadd.f32 %v4165_v28, %v2221_v47  ;;  %v2223_v7 = vmul.f32 %v3149_v22, %v4159_v20  ;;  %v4293_v18 = vpop.f32.mrb[60].mxu1 }
 0x224   : > { %v2298_v8 = vadd.f32 %v4167_v42, %v2222_v15  ;;  %v2224_v25 = vmul.f32 %v3150_v33, %v4163_v24  ;;  %v4297_v2 = vpop.f32.mrb[61].mxu1  ;;  %2640 = vmatprep.mubr.bf16.mxu1 %v2412_v9 }
 0x225   : > { %v2299_v11 = vadd.f32 %v4165_v28, %v2223_v7  ;;  %v4300_v4 = vpop.f32.mrb[62].mxu1  ;;  %2641 = vmatmul.mubr.bf16.gmra.mrb[84].mxu1 %v2411_v12  ;;  %v2361_v6 = vmax.f32 %v2297_v40, 0.0 }
 0x226   : > { %v2300_v0 = vadd.f32 %v4167_v42, %v2224_v25  ;;  %v4303_v29 = vpop.f32.mrb[63].mxu1  ;;  %v1840_v55 = vpop.f32.mrb[28].mxu0  ;;  %v2362_v61 = vmax.f32 %v2298_v8, 0.0 }
 0x227   : > { %v2363_v63 = vmax.f32 %v2299_v11, 0.0  ;;  %v3151_v1 = vadd.f32 %v1840_v55, %v4139_v14  ;;  %v1842_v59 = vpop.f32.mrb[29].mxu0 }
 0x228   : > { %v2364_v36 = vmax.f32 %v2300_v0, 0.0  ;;  %v3152_v54 = vadd.f32 %v1842_v59, %v4141_v19  ;;  %v1844_v52 = vpop.f32.mrb[30].mxu0 }
 0x229   : > { %v2225_v53 = vmul.f32 %v3151_v1, %v4159_v20  ;;  %v3153_v44 = vadd.f32 %v1844_v52, %v4143_v17  ;;  %v1846_v47 = vpop.f32.mrb[31].mxu0  ;;  %v2413_v22 = vpack.c.bf16 %v2363_v63, %v2361_v6 }
 0x22a   : > { %v2226_v49 = vmul.f32 %v3152_v54, %v4163_v24  ;;  %v3154_v12 = vadd.f32 %v1846_v47, %v4145_v3  ;;  %v2414_v15 = vpack.c.bf16 %v2364_v36, %v2362_v61 }
 0x22b   : > { %v2301_v33 = vadd.f32 %v4165_v28, %v2225_v53  ;;  %v2227_v14 = vmul.f32 %v3153_v44, %v4159_v20 }
 0x22c   : > { %v2302_v9 = vadd.f32 %v4167_v42, %v2226_v49  ;;  %v2228_v19 = vmul.f32 %v3154_v12, %v4163_v24  ;;  %2648 = vmatprep.mubr.bf16.mxu1 %v2414_v15 }
 0x22d   : > { %v2303_v40 = vadd.f32 %v4165_v28, %v2227_v14  ;;  %2649 = vmatmul.mubr.bf16.gmra.mrb[88].mxu1 %v2413_v22  ;;  %v2365_v8 = vmax.f32 %v2301_v33, 0.0 }
 0x22e   : > { %v2304_v17 = vadd.f32 %v4167_v42, %v2228_v19  ;;  %v1850_v7 = vpop.f32.mrb[32].mxu0  ;;  %v2366_v0 = vmax.f32 %v2302_v9, 0.0 }
 0x22f   : > { %v2367_v25 = vmax.f32 %v2303_v40, 0.0  ;;  %v3155_v3 = vadd.f32 %v1850_v7, %v4150_v16  ;;  %v1852_v11 = vpop.f32.mrb[33].mxu0 }
 0x230   : > { %v2368_v55 = vmax.f32 %v2304_v17, 0.0  ;;  %v3156_v6 = vadd.f32 %v1852_v11, %v4152_v58  ;;  %v1854_v63 = vpop.f32.mrb[34].mxu0 }
 0x231   : > { %v2229_v1 = vmul.f32 %v3155_v3, %v4159_v20  ;;  %v3157_v59 = vadd.f32 %v1854_v63, %v4157_v13  ;;  %v1856_v61 = vpop.f32.mrb[35].mxu0  ;;  %v2415_v36 = vpack.c.bf16 %v2367_v25, %v2365_v8 }
 0x232   : > { %v2230_v54 = vmul.f32 %v3156_v6, %v4163_v24  ;;  %v3158_v52 = vadd.f32 %v1856_v61, %v4161_v23  ;;  %v2416_v53 = vpack.c.bf16 %v2368_v55, %v2366_v0 }
 0x233   : > { %v2305_v44 = vadd.f32 %v4165_v28, %v2229_v1  ;;  %v2231_v16 = vmul.f32 %v3157_v59, %v4159_v20 }
 0x234   : > { %v2306_v47 = vadd.f32 %v4167_v42, %v2230_v54  ;;  %v2232_v58 = vmul.f32 %v3158_v52, %v4163_v24  ;;  %2656 = vmatprep.mubr.bf16.mxu1 %v2416_v53 }
 0x235   : > { %v2307_v22 = vadd.f32 %v4165_v28, %v2231_v16  ;;  %2657 = vmatmul.mubr.bf16.gmra.mrb[92].mxu1 %v2415_v36  ;;  %v2369_v12 = vmax.f32 %v2305_v44, 0.0 }
 0x236   : > { %v2308_v13 = vadd.f32 %v4167_v42, %v2232_v58  ;;  %v1860_v49 = vpop.f32.mrb[36].mxu0  ;;  %v2370_v14 = vmax.f32 %v2306_v47, 0.0 }
 0x237   : > { %v2371_v15 = vmax.f32 %v2307_v22, 0.0  ;;  %v3159_v23 = vadd.f32 %v1860_v49, %v4173_v39  ;;  %v1862_v33 = vpop.f32.mrb[37].mxu0 }
 0x238   : > { %v2372_v9 = vmax.f32 %v2308_v13, 0.0  ;;  %v3160_v19 = vadd.f32 %v1862_v33, %v4177_v43  ;;  %v1864_v40 = vpop.f32.mrb[38].mxu0 }
 0x239   : > { %v2233_v17 = vmul.f32 %v3159_v23, %v4159_v20  ;;  %v3161_v7 = vadd.f32 %v1864_v40, %v4180_v46  ;;  %v1866_v8 = vpop.f32.mrb[39].mxu0  ;;  %v2417_v25 = vpack.c.bf16 %v2371_v15, %v2369_v12 }
 0x23a   : > { %v2234_v3 = vmul.f32 %v3160_v19, %v4163_v24  ;;  %v3162_v11 = vadd.f32 %v1866_v8, %v4183_v48  ;;  %v2418_v0 = vpack.c.bf16 %v2372_v9, %v2370_v14 }
 0x23b   : > { %v2309_v55 = vadd.f32 %v4165_v28, %v2233_v17  ;;  %v2235_v39 = vmul.f32 %v3161_v7, %v4159_v20 }
 0x23c   : > { %v2310_v6 = vadd.f32 %v4167_v42, %v2234_v3  ;;  %v2236_v43 = vmul.f32 %v3162_v11, %v4163_v24  ;;  %2664 = vmatprep.mubr.bf16.mxu1 %v2418_v0 }
 0x23d   : > { %v2311_v63 = vadd.f32 %v4165_v28, %v2235_v39  ;;  %2665 = vmatmul.mubr.bf16.gmra.mrb[96].mxu1 %v2417_v25  ;;  %v2373_v59 = vmax.f32 %v2309_v55, 0.0 }
 0x23e   : > { %v2312_v46 = vadd.f32 %v4167_v42, %v2236_v43  ;;  %v1870_v1 = vpop.f32.mrb[40].mxu0  ;;  %v2374_v54 = vmax.f32 %v2310_v6, 0.0 }
 0x23f   : > { %v2375_v61 = vmax.f32 %v2311_v63, 0.0  ;;  %v3163_v48 = vadd.f32 %v1870_v1, %v4193_v35  ;;  %v1872_v36 = vpop.f32.mrb[41].mxu0 }
 0x240   : > { %v2376_v52 = vmax.f32 %v2312_v46, 0.0  ;;  %v3164_v53 = vadd.f32 %v1872_v36, %v4197_v38  ;;  %v1874_v44 = vpop.f32.mrb[42].mxu0 }
 0x241   : > { %v2237_v16 = vmul.f32 %v3163_v48, %v4159_v20  ;;  %v3165_v47 = vadd.f32 %v1874_v44, %v4200_v41  ;;  %v1876_v58 = vpop.f32.mrb[43].mxu0  ;;  %v2419_v22 = vpack.c.bf16 %v2375_v61, %v2373_v59 }
 0x242   : > { %v2238_v13 = vmul.f32 %v3164_v53, %v4163_v24  ;;  %v3166_v49 = vadd.f32 %v1876_v58, %v4203_v21  ;;  %v2420_v12 = vpack.c.bf16 %v2376_v52, %v2374_v54 }
 0x243   : > { %v2313_v15 = vadd.f32 %v4165_v28, %v2237_v16  ;;  %v2239_v35 = vmul.f32 %v3165_v47, %v4159_v20 }
 0x244   : > { %v2314_v23 = vadd.f32 %v4167_v42, %v2238_v13  ;;  %v2240_v38 = vmul.f32 %v3166_v49, %v4163_v24  ;;  %2672 = vmatprep.mubr.bf16.mxu1 %v2420_v12 }
 0x245   : > { %v2315_v33 = vadd.f32 %v4165_v28, %v2239_v35  ;;  %2673 = vmatmul.mubr.bf16.gmra.mrb[100].mxu1 %v2419_v22  ;;  %v2377_v9 = vmax.f32 %v2313_v15, 0.0 }
 0x246   : > { %v2316_v41 = vadd.f32 %v4167_v42, %v2240_v38  ;;  %v1880_v14 = vpop.f32.mrb[44].mxu0  ;;  %v2378_v17 = vmax.f32 %v2314_v23, 0.0 }
 0x247   : > { %v2379_v19 = vmax.f32 %v2315_v33, 0.0  ;;  %v3167_v21 = vadd.f32 %v1880_v14, %v4213_v34  ;;  %v1882_v40 = vpop.f32.mrb[45].mxu0 }
 0x248   : > { %v2380_v7 = vmax.f32 %v2316_v41, 0.0  ;;  %v3168_v8 = vadd.f32 %v1882_v40, %v4217_v50  ;;  %v1884_v25 = vpop.f32.mrb[46].mxu0 }
 0x249   : > { %v2241_v3 = vmul.f32 %v3167_v21, %v4159_v20  ;;  %v3169_v11 = vadd.f32 %v1884_v25, %v4220_v51  ;;  %v1886_v0 = vpop.f32.mrb[47].mxu0  ;;  %v2421_v55 = vpack.c.bf16 %v2379_v19, %v2377_v9 }
 0x24a   : > { %v2242_v39 = vmul.f32 %v3168_v8, %v4163_v24  ;;  %v3170_v6 = vadd.f32 %v1886_v0, %v4223_v37  ;;  %v2422_v43 = vpack.c.bf16 %v2380_v7, %v2378_v17 }
 0x24b   : > { %v2317_v63 = vadd.f32 %v4165_v28, %v2241_v3  ;;  %v2243_v34 = vmul.f32 %v3169_v11, %v4159_v20 }
 0x24c   : > { %v2318_v46 = vadd.f32 %v4167_v42, %v2242_v39  ;;  %v2244_v50 = vmul.f32 %v3170_v6, %v4163_v24  ;;  %2680 = vmatprep.mubr.bf16.mxu1 %v2422_v43 }
 0x24d   : > { %v2319_v1 = vadd.f32 %v4165_v28, %v2243_v34  ;;  %2681 = vmatmul.mubr.bf16.gmra.mrb[104].mxu1 %v2421_v55  ;;  %v2381_v61 = vmax.f32 %v2317_v63, 0.0 }
 0x24e   : > { %v2320_v51 = vadd.f32 %v4167_v42, %v2244_v50  ;;  %v1890_v59 = vpop.f32.mrb[48].mxu0  ;;  %v2382_v54 = vmax.f32 %v2318_v46, 0.0 }
 0x24f   : > { %v2383_v48 = vmax.f32 %v2319_v1, 0.0  ;;  %v3171_v37 = vadd.f32 %v1890_v59, %v4233_v32  ;;  %v1892_v36 = vpop.f32.mrb[49].mxu0 }
 0x250   : > { %v2384_v52 = vmax.f32 %v2320_v51, 0.0  ;;  %v3172_v53 = vadd.f32 %v1892_v36, %v4237_v10  ;;  %v1894_v44 = vpop.f32.mrb[50].mxu0 }
 0x251   : > { %v2245_v16 = vmul.f32 %v3171_v37, %v4159_v20  ;;  %v3173_v47 = vadd.f32 %v1894_v44, %v4240_v60  ;;  %v1896_v58 = vpop.f32.mrb[51].mxu0  ;;  %v2423_v22 = vpack.c.bf16 %v2383_v48, %v2381_v61 }
 0x252   : > { %v2246_v13 = vmul.f32 %v3172_v53, %v4163_v24  ;;  %v3174_v49 = vadd.f32 %v1896_v58, %v4243_v5  ;;  %v2424_v12 = vpack.c.bf16 %v2384_v52, %v2382_v54 }
 0x253   : > { %v2321_v15 = vadd.f32 %v4165_v28, %v2245_v16  ;;  %v2247_v32 = vmul.f32 %v3173_v47, %v4159_v20 }
 0x254   : > { %v2322_v35 = vadd.f32 %v4167_v42, %v2246_v13  ;;  %v2248_v10 = vmul.f32 %v3174_v49, %v4163_v24  ;;  %2688 = vmatprep.mubr.bf16.mxu1 %v2424_v12 }
 0x255   : > { %v2323_v23 = vadd.f32 %v4165_v28, %v2247_v32  ;;  %2689 = vmatmul.mubr.bf16.gmra.mrb[108].mxu1 %v2423_v22  ;;  %v2385_v33 = vmax.f32 %v2321_v15, 0.0 }
 0x256   : > { %v2324_v60 = vadd.f32 %v4167_v42, %v2248_v10  ;;  %v1900_v38 = vpop.f32.mrb[52].mxu0  ;;  %v2386_v9 = vmax.f32 %v2322_v35, 0.0 }
 0x257   : > { %v2387_v41 = vmax.f32 %v2323_v23, 0.0  ;;  %v3175_v5 = vadd.f32 %v1900_v38, %v4253_v30  ;;  %v1902_v14 = vpop.f32.mrb[53].mxu0 }
 0x258   : > { %v2388_v19 = vmax.f32 %v2324_v60, 0.0  ;;  %v3176_v21 = vadd.f32 %v1902_v14, %v4257_v56  ;;  %v1904_v40 = vpop.f32.mrb[54].mxu0 }
 0x259   : > { %v2249_v17 = vmul.f32 %v3175_v5, %v4159_v20  ;;  %v3177_v7 = vadd.f32 %v1904_v40, %v4260_v57  ;;  %v1906_v8 = vpop.f32.mrb[55].mxu0  ;;  %v2425_v25 = vpack.c.bf16 %v2387_v41, %v2385_v33 }
 0x25a   : > { %v2250_v3 = vmul.f32 %v3176_v21, %v4163_v24  ;;  %v3178_v11 = vadd.f32 %v1906_v8, %v4263_v27  ;;  %v2426_v0 = vpack.c.bf16 %v2388_v19, %v2386_v9 }
 0x25b   : > { %v2325_v55 = vadd.f32 %v4165_v28, %v2249_v17  ;;  %v2251_v30 = vmul.f32 %v3177_v7, %v4159_v20 }
 0x25c   : > { %v2326_v39 = vadd.f32 %v4167_v42, %v2250_v3  ;;  %v2252_v56 = vmul.f32 %v3178_v11, %v4163_v24  ;;  %2696 = vmatprep.mubr.bf16.mxu1 %v2426_v0 }
 0x25d   : > { %v2327_v6 = vadd.f32 %v4165_v28, %v2251_v30  ;;  %2697 = vmatmul.mubr.bf16.gmra.mrb[112].mxu1 %v2425_v25  ;;  %v2389_v63 = vmax.f32 %v2325_v55, 0.0 }
 0x25e   : > { %v2328_v57 = vadd.f32 %v4167_v42, %v2252_v56  ;;  %v1910_v43 = vpop.f32.mrb[56].mxu0  ;;  %v2390_v50 = vmax.f32 %v2326_v39, 0.0 }
 0x25f   : > { %v2391_v34 = vmax.f32 %v2327_v6, 0.0  ;;  %v3179_v27 = vadd.f32 %v1910_v43, %v4273_v26  ;;  %v1912_v46 = vpop.f32.mrb[57].mxu0 }
 0x260   : > { %v2392_v1 = vmax.f32 %v2328_v57, 0.0  ;;  %v3180_v51 = vadd.f32 %v1912_v46, %v4277_v45  ;;  %v1914_v59 = vpop.f32.mrb[58].mxu0 }
 0x261   : > { %v2253_v61 = vmul.f32 %v3179_v27, %v4159_v20  ;;  %v3181_v48 = vadd.f32 %v1914_v59, %v4280_v62  ;;  %v1916_v37 = vpop.f32.mrb[59].mxu0  ;;  %v2427_v36 = vpack.c.bf16 %v2391_v34, %v2389_v63 }
 0x262   : > { %v2254_v54 = vmul.f32 %v3180_v51, %v4163_v24  ;;  %v3182_v52 = vadd.f32 %v1916_v37, %v4283_v31  ;;  %v2428_v53 = vpack.c.bf16 %v2392_v1, %v2390_v50 }
 0x263   : > { %v2329_v44 = vadd.f32 %v4165_v28, %v2253_v61  ;;  %v2255_v26 = vmul.f32 %v3181_v48, %v4159_v20 }
 0x264   : > { %v2330_v16 = vadd.f32 %v4167_v42, %v2254_v54  ;;  %v2256_v45 = vmul.f32 %v3182_v52, %v4163_v24  ;;  %2704 = vmatprep.mubr.bf16.mxu1 %v2428_v53 }
 0x265   : > { %v2331_v47 = vadd.f32 %v4165_v28, %v2255_v26  ;;  %2705 = vmatmul.mubr.bf16.gmra.mrb[116].mxu1 %v2427_v36  ;;  %v2393_v22 = vmax.f32 %v2329_v44, 0.0 }
 0x266   : > { %v2332_v62 = vadd.f32 %v4167_v42, %v2256_v45  ;;  %v1920_v58 = vpop.f32.mrb[60].mxu0  ;;  %v2394_v12 = vmax.f32 %v2330_v16, 0.0 }
 0x267   : > { %v2395_v13 = vmax.f32 %v2331_v47, 0.0  ;;  %v3183_v31 = vadd.f32 %v1920_v58, %v4293_v18  ;;  %v1922_v49 = vpop.f32.mrb[61].mxu0 }
 0x268   : > { %v2396_v15 = vmax.f32 %v2332_v62, 0.0  ;;  %v3184_v32 = vadd.f32 %v1922_v49, %v4297_v2  ;;  %v1924_v35 = vpop.f32.mrb[62].mxu0 }
 0x269   : > { %v2257_v10 = vmul.f32 %v3183_v31, %v4159_v20  ;;  %v3185_v23 = vadd.f32 %v1924_v35, %v4300_v4  ;;  %v1926_v60 = vpop.f32.mrb[63].mxu0  ;;  %v2429_v38 = vpack.c.bf16 %v2395_v13, %v2393_v22 }
 0x26a   : > { %v2258_v33 = vmul.f32 %v3184_v32, %v4163_v24  ;;  %v3186_v41 = vadd.f32 %v1926_v60, %v4303_v29  ;;  %v2430_v5 = vpack.c.bf16 %v2396_v15, %v2394_v12 }
 0x26b   : > { %v2333_v14 = vadd.f32 %v4165_v28, %v2257_v10  ;;  %v2259_v18 = vmul.f32 %v3185_v23, %v4159_v20 }
 0x26c   : > { %v2334_v9 = vadd.f32 %v4167_v42, %v2258_v33  ;;  %v2260_v2 = vmul.f32 %v3186_v41, %v4163_v24  ;;  %2712 = vmatprep.mubr.bf16.mxu1 %v2430_v5  ;;  %v4419_v24 = vld [vmem:[%s4551_s6] ss:$0 sm:$0xff] }
 0x26d   : > { %v2335_v4 = vadd.f32 %v4165_v28, %v2259_v18  ;;  %2713 = vmatmul.mubr.bf16.gmra.mrb[120].mxu1 %v2429_v38  ;;  %v2397_v21 = vmax.f32 %v2333_v14, 0.0 }
 0x26e   : > { %v2336_v19 = vadd.f32 %v4167_v42, %v2260_v2  ;;  %v2398_v29 = vmax.f32 %v2334_v9, 0.0 }
 0x26f   : > { %v2399_v40 = vmax.f32 %v2335_v4, 0.0 }
 0x270   : > { %v2400_v17 = vmax.f32 %v2336_v19, 0.0 }
 0x271   : > { %v2431_v7 = vpack.c.bf16 %v2399_v40, %v2397_v21 }
 0x272   : > { %v2432_v8 = vpack.c.bf16 %v2400_v17, %v2398_v29 }
 0x274   : > { %2720 = vmatprep.mubr.bf16.mxu1 %v2432_v8 }
 0x275   : > { %2721 = vmatmul.mubr.bf16.gmra.mrb[124].mxu1 %v2431_v7 }
 0x2d0   : > { %v3027_v20 = vpop.f32.mrb[64].mxu1 }
 0x2d1   : > { %v3028_v28 = vpop.f32.mrb[65].mxu1 }
 0x2d2   : > { %v3029_v25 = vadd.f32 %v3028_v28, %v3027_v20  ;;  %v3030_v42 = vpop.f32.mrb[66].mxu1 }
 0x2d3   : > { %v3031_v3 = vpop.f32.mrb[67].mxu1 }
 0x2d4   : > { %v2603_v11 = vadd.f32 %v3029_v25, %v4419_v24  ;;  %v3032_v0 = vadd.f32 %v3031_v3, %v3030_v42 }
 0x2d6   : > { %2729 = vst [vmem:[%s4422_s17] sm:$0xff] %v2603_v11  ;;  %v2606_v55 = vadd.f32 %v3032_v0, %v4419_v24 }
 0x2d8   : > { %2730 = vst [vmem:[%s4422_s17 + $0x8] sm:$0xff] %v2606_v55  ;;  %v3033_v30 = vpop.f32.mrb[68].mxu1 }
 0x2d9   : > { %v3034_v39 = vpop.f32.mrb[69].mxu1 }
 0x2da   : > { %v3035_v56 = vadd.f32 %v3034_v39, %v3033_v30  ;;  %v3036_v6 = vpop.f32.mrb[70].mxu1 }
 0x2db   : > { %v3037_v57 = vpop.f32.mrb[71].mxu1 }
 0x2dc   : > { %v2611_v43 = vadd.f32 %v3035_v56, %v4419_v24  ;;  %v3038_v63 = vadd.f32 %v3037_v57, %v3036_v6 }
 0x2de   : > { %2731 = vst [vmem:[%s4422_s17 + $0x10] sm:$0xff] %v2611_v43  ;;  %v2614_v34 = vadd.f32 %v3038_v63, %v4419_v24 }
 0x2e0   : > { %2732 = vst [vmem:[%s4422_s17 + $0x18] sm:$0xff] %v2614_v34  ;;  %v3039_v27 = vpop.f32.mrb[72].mxu1 }
 0x2e1   : > { %v3040_v46 = vpop.f32.mrb[73].mxu1 }
 0x2e2   : > { %v3041_v50 = vadd.f32 %v3040_v46, %v3039_v27  ;;  %v3042_v1 = vpop.f32.mrb[74].mxu1 }
 0x2e3   : > { %v3043_v51 = vpop.f32.mrb[75].mxu1 }
 0x2e4   : > { %v2619_v59 = vadd.f32 %v3041_v50, %v4419_v24  ;;  %v3044_v61 = vadd.f32 %v3043_v51, %v3042_v1 }
 0x2e6   : > { %2733 = vst [vmem:[%s4422_s17 + $0x20] sm:$0xff] %v2619_v59  ;;  %v2622_v48 = vadd.f32 %v3044_v61, %v4419_v24 }
 0x2e8   : > { %2734 = vst [vmem:[%s4422_s17 + $0x28] sm:$0xff] %v2622_v48  ;;  %v3045_v37 = vpop.f32.mrb[76].mxu1 }
 0x2e9   : > { %v3046_v36 = vpop.f32.mrb[77].mxu1 }
 0x2ea   : > { %v3047_v54 = vadd.f32 %v3046_v36, %v3045_v37  ;;  %v3048_v52 = vpop.f32.mrb[78].mxu1 }
 0x2eb   : > { %v3049_v53 = vpop.f32.mrb[79].mxu1 }
 0x2ec   : > { %v2627_v44 = vadd.f32 %v3047_v54, %v4419_v24  ;;  %v3050_v26 = vadd.f32 %v3049_v53, %v3048_v52 }
 0x2ee   : > { %2735 = vst [vmem:[%s4422_s17 + $0x30] sm:$0xff] %v2627_v44  ;;  %v2630_v16 = vadd.f32 %v3050_v26, %v4419_v24 }
 0x2f0   : > { %2736 = vst [vmem:[%s4422_s17 + $0x38] sm:$0xff] %v2630_v16  ;;  %v3051_v45 = vpop.f32.mrb[80].mxu1 }
 0x2f1   : > { %v3052_v47 = vpop.f32.mrb[81].mxu1 }
 0x2f2   : > { %v3053_v62 = vadd.f32 %v3052_v47, %v3051_v45  ;;  %v3054_v58 = vpop.f32.mrb[82].mxu1 }
 0x2f3   : > { %v3055_v22 = vpop.f32.mrb[83].mxu1 }
 0x2f4   : > { %v2635_v13 = vadd.f32 %v3053_v62, %v4419_v24  ;;  %v3056_v31 = vadd.f32 %v3055_v22, %v3054_v58 }
 0x2f6   : > { %2737 = vst [vmem:[%s4422_s17 + $0x40] sm:$0xff] %v2635_v13  ;;  %v2638_v49 = vadd.f32 %v3056_v31, %v4419_v24 }
 0x2f8   : > { %2738 = vst [vmem:[%s4422_s17 + $0x48] sm:$0xff] %v2638_v49  ;;  %v3057_v12 = vpop.f32.mrb[84].mxu1 }
 0x2f9   : > { %v3058_v15 = vpop.f32.mrb[85].mxu1 }
 0x2fa   : > { %v3059_v32 = vadd.f32 %v3058_v15, %v3057_v12  ;;  %v3060_v35 = vpop.f32.mrb[86].mxu1 }
 0x2fb   : > { %v3061_v10 = vpop.f32.mrb[87].mxu1 }
 0x2fc   : > { %v2643_v23 = vadd.f32 %v3059_v32, %v4419_v24  ;;  %v3062_v60 = vadd.f32 %v3061_v10, %v3060_v35 }
 0x2fe   : > { %2739 = vst [vmem:[%s4422_s17 + $0x50] sm:$0xff] %v2643_v23  ;;  %v2646_v38 = vadd.f32 %v3062_v60, %v4419_v24 }
 0x300   : > { %2740 = vst [vmem:[%s4422_s17 + $0x58] sm:$0xff] %v2646_v38  ;;  %v3063_v33 = vpop.f32.mrb[88].mxu1 }
 0x301   : > { %v3064_v41 = vpop.f32.mrb[89].mxu1 }
 0x302   : > { %v3065_v5 = vadd.f32 %v3064_v41, %v3063_v33  ;;  %v3066_v14 = vpop.f32.mrb[90].mxu1 }
 0x303   : > { %v3067_v18 = vpop.f32.mrb[91].mxu1 }
 0x304   : > { %v2651_v9 = vadd.f32 %v3065_v5, %v4419_v24  ;;  %v3068_v2 = vadd.f32 %v3067_v18, %v3066_v14 }
 0x306   : > { %2741 = vst [vmem:[%s4422_s17 + $0x60] sm:$0xff] %v2651_v9  ;;  %v2654_v4 = vadd.f32 %v3068_v2, %v4419_v24 }
 0x308   : > { %2742 = vst [vmem:[%s4422_s17 + $0x68] sm:$0xff] %v2654_v4  ;;  %v3069_v19 = vpop.f32.mrb[92].mxu1 }
 0x309   : > { %v3070_v21 = vpop.f32.mrb[93].mxu1 }
 0x30a   : > { %v3071_v40 = vadd.f32 %v3070_v21, %v3069_v19  ;;  %v3072_v29 = vpop.f32.mrb[94].mxu1 }
 0x30b   : > { %v3073_v17 = vpop.f32.mrb[95].mxu1 }
 0x30c   : > { %v2659_v7 = vadd.f32 %v3071_v40, %v4419_v24  ;;  %v3074_v8 = vadd.f32 %v3073_v17, %v3072_v29 }
 0x30e   : > { %2743 = vst [vmem:[%s4422_s17 + $0x70] sm:$0xff] %v2659_v7  ;;  %v2662_v20 = vadd.f32 %v3074_v8, %v4419_v24 }
 0x310   : > { %2744 = vst [vmem:[%s4422_s17 + $0x78] sm:$0xff] %v2662_v20  ;;  %v3075_v28 = vpop.f32.mrb[96].mxu1 }
 0x311   : > { %v3076_v25 = vpop.f32.mrb[97].mxu1 }
 0x312   : > { %v3077_v42 = vadd.f32 %v3076_v25, %v3075_v28  ;;  %v3078_v3 = vpop.f32.mrb[98].mxu1 }
 0x313   : > { %v3079_v11 = vpop.f32.mrb[99].mxu1 }
 0x314   : > { %v2667_v0 = vadd.f32 %v3077_v42, %v4419_v24  ;;  %v3080_v55 = vadd.f32 %v3079_v11, %v3078_v3 }
 0x316   : > { %2745 = vst [vmem:[%s4422_s17 + $0x80] sm:$0xff] %v2667_v0  ;;  %v2670_v30 = vadd.f32 %v3080_v55, %v4419_v24 }
 0x318   : > { %2746 = vst [vmem:[%s4422_s17 + $0x88] sm:$0xff] %v2670_v30  ;;  %v3081_v39 = vpop.f32.mrb[100].mxu1 }
 0x319   : > { %v3082_v56 = vpop.f32.mrb[101].mxu1 }
 0x31a   : > { %v3083_v6 = vadd.f32 %v3082_v56, %v3081_v39  ;;  %v3084_v57 = vpop.f32.mrb[102].mxu1 }
 0x31b   : > { %v3085_v43 = vpop.f32.mrb[103].mxu1 }
 0x31c   : > { %v2675_v63 = vadd.f32 %v3083_v6, %v4419_v24  ;;  %v3086_v34 = vadd.f32 %v3085_v43, %v3084_v57 }
 0x31e   : > { %2747 = vst [vmem:[%s4422_s17 + $0x90] sm:$0xff] %v2675_v63  ;;  %v2678_v27 = vadd.f32 %v3086_v34, %v4419_v24 }
 0x320   : > { %2748 = vst [vmem:[%s4422_s17 + $0x98] sm:$0xff] %v2678_v27  ;;  %v3087_v46 = vpop.f32.mrb[104].mxu1 }
 0x321   : > { %v3088_v50 = vpop.f32.mrb[105].mxu1 }
 0x322   : > { %v3089_v1 = vadd.f32 %v3088_v50, %v3087_v46  ;;  %v3090_v51 = vpop.f32.mrb[106].mxu1 }
 0x323   : > { %v3091_v59 = vpop.f32.mrb[107].mxu1 }
 0x324   : > { %v2683_v61 = vadd.f32 %v3089_v1, %v4419_v24  ;;  %v3092_v48 = vadd.f32 %v3091_v59, %v3090_v51 }
 0x326   : > { %2749 = vst [vmem:[%s4422_s17 + $0xa0] sm:$0xff] %v2683_v61  ;;  %v2686_v37 = vadd.f32 %v3092_v48, %v4419_v24 }
 0x328   : > { %2750 = vst [vmem:[%s4422_s17 + $0xa8] sm:$0xff] %v2686_v37  ;;  %v3093_v36 = vpop.f32.mrb[108].mxu1 }
 0x329   : > { %v3094_v54 = vpop.f32.mrb[109].mxu1 }
 0x32a   : > { %v3095_v52 = vadd.f32 %v3094_v54, %v3093_v36  ;;  %v3096_v53 = vpop.f32.mrb[110].mxu1 }
 0x32b   : > { %v3097_v44 = vpop.f32.mrb[111].mxu1 }
 0x32c   : > { %v2691_v26 = vadd.f32 %v3095_v52, %v4419_v24  ;;  %v3098_v16 = vadd.f32 %v3097_v44, %v3096_v53 }
 0x32e   : > { %2751 = vst [vmem:[%s4422_s17 + $0xb0] sm:$0xff] %v2691_v26  ;;  %v2694_v45 = vadd.f32 %v3098_v16, %v4419_v24 }
 0x330   : > { %2752 = vst [vmem:[%s4422_s17 + $0xb8] sm:$0xff] %v2694_v45  ;;  %v3099_v47 = vpop.f32.mrb[112].mxu1 }
 0x331   : > { %v3100_v62 = vpop.f32.mrb[113].mxu1 }
 0x332   : > { %v3101_v58 = vadd.f32 %v3100_v62, %v3099_v47  ;;  %v3102_v22 = vpop.f32.mrb[114].mxu1 }
 0x333   : > { %v3103_v13 = vpop.f32.mrb[115].mxu1 }
 0x334   : > { %v2699_v31 = vadd.f32 %v3101_v58, %v4419_v24  ;;  %v3104_v49 = vadd.f32 %v3103_v13, %v3102_v22 }
 0x336   : > { %2753 = vst [vmem:[%s4422_s17 + $0xc0] sm:$0xff] %v2699_v31  ;;  %v2702_v12 = vadd.f32 %v3104_v49, %v4419_v24 }
 0x338   : > { %2754 = vst [vmem:[%s4422_s17 + $0xc8] sm:$0xff] %v2702_v12  ;;  %v3105_v15 = vpop.f32.mrb[116].mxu1 }
 0x339   : > { %v3106_v32 = vpop.f32.mrb[117].mxu1 }
 0x33a   : > { %v3107_v35 = vadd.f32 %v3106_v32, %v3105_v15  ;;  %v3108_v10 = vpop.f32.mrb[118].mxu1 }
 0x33b   : > { %v3109_v23 = vpop.f32.mrb[119].mxu1 }
 0x33c   : > { %v2707_v60 = vadd.f32 %v3107_v35, %v4419_v24  ;;  %v3110_v38 = vadd.f32 %v3109_v23, %v3108_v10 }
 0x33e   : > { %2755 = vst [vmem:[%s4422_s17 + $0xd0] sm:$0xff] %v2707_v60  ;;  %v2710_v33 = vadd.f32 %v3110_v38, %v4419_v24 }
 0x340   : > { %2756 = vst [vmem:[%s4422_s17 + $0xd8] sm:$0xff] %v2710_v33  ;;  %v3111_v41 = vpop.f32.mrb[120].mxu1 }
 0x341   : > { %v3112_v5 = vpop.f32.mrb[121].mxu1 }
 0x342   : > { %v3113_v14 = vadd.f32 %v3112_v5, %v3111_v41  ;;  %v3114_v18 = vpop.f32.mrb[122].mxu1 }
 0x343   : > { %v3115_v9 = vpop.f32.mrb[123].mxu1 }
 0x344   : > { %v2715_v2 = vadd.f32 %v3113_v14, %v4419_v24  ;;  %v3116_v4 = vadd.f32 %v3115_v9, %v3114_v18 }
 0x346   : > { %2757 = vst [vmem:[%s4422_s17 + $0xe0] sm:$0xff] %v2715_v2  ;;  %v2718_v19 = vadd.f32 %v3116_v4, %v4419_v24 }
 0x348   : > { %2758 = vst [vmem:[%s4422_s17 + $0xe8] sm:$0xff] %v2718_v19  ;;  %v3117_v21 = vpop.f32.mrb[124].mxu1 }
 0x349   : > { %v3118_v40 = vpop.f32.mrb[125].mxu1 }
 0x34a   : > { %v3119_v29 = vadd.f32 %v3118_v40, %v3117_v21  ;;  %v3120_v17 = vpop.f32.mrb[126].mxu1 }
 0x34b   : > { %v3121_v7 = vpop.f32.mrb[127].mxu1 }
 0x34c   : > { %v2723_v8 = vadd.f32 %v3119_v29, %v4419_v24  ;;  %v3122_v20 = vadd.f32 %v3121_v7, %v3120_v17 }
 0x34e   : > { %2759 = vst [vmem:[%s4422_s17 + $0xf0] sm:$0xff] %v2723_v8  ;;  %v2726_v28 = vadd.f32 %v3122_v20, %v4419_v24 }
 0x350   : > { %2760 = vst [vmem:[%s4422_s17 + $0xf8] sm:$0xff] %v2726_v28 }
 0x351   : > { %3387 = shalt.err (!%p3384_p5)
}
 0x352   : > { %s3388_s30 = scalar_lea.hbm %s4489_s22, 4096  ;;  %s3392_s18 = scalar_lea.hbm %s4552_s7, 8192 }
 0x353   : > { %p3389_p6 = scmp.ne.s32.totalorder %s4489_s22, %s3388_s30  ;;  %p3393_p10 = scmp.lt.u32.totalorder %s4489_s22, %s4552_s7 }
 0x354   : > { %p3394_p11 = scmp.lt.u32.totalorder %s3392_s18, %s3388_s30  ;;  %p3396_p13 = scmp.lt.u32.totalorder %s3388_s30, %s4489_s22 }
 0x355   : > { %p3390_p7 = pnand %p3389_p6, %p3539_p4 }
 0x356   : > { %p3395_p12 = por %p3394_p11, %p3393_p10 }
 0x357   : > { %p3391_p9 = pneg %p3390_p7 }
 0x358   : > { %p3397_p0 = por %p3396_p13, %p3395_p12 }
 0x35a   : > { %p3398_p1 = pnand %p3397_p0, %p3391_p9 }
 0x35c   : > { %3401 = shalt.err (!%p3398_p1)
}
 0x35d   : > { %s3458_s23 = smov 128  }
 0x35e   : > { %3253 = dma.vmem_to_hbm [thread:$0]  (%p3539_p4), %s4493_s19, 4096, %s4489_s22, %s4498_s27, %s3458_s23, %s3458_s23, %s3456_s8  }
 0x35f PF: > { %p3260_p2 = scmp.ge.s32.totalorder %s3452_s29, 2  ;;  %s2793_s10 = sand.u32 1, %s3432_s24  }
 0x360   : > { %s2794_s12 = scalar_lea.sflag [#allocation4], %s2793_s10 }
 0x361   : > { %p3256_p3 = pnand %p3260_p2, %p3546_p8 }
 0x363   : > { %3427 = dma.done.wait (!%p3256_p3), %s2794_s12, 4096  }
 0x364   : > { %3429 = vsyncadd (!%p3256_p3), %s2794_s12, 4294963200  ;;  %s20_s29 = sadd.s32 1, %s3452_s29   ;;  %s4555_s24 = smov %s3436_s25 }
 0x365   : > { %p17_p5 = scmp.ge.s32.totalorder %s20_s29, 4   ;;  %s4556_s25 = smov %s3440_s26 }
 0x366   : > { %s4557_s26 = smov %s3552_s14  ;;  %s4558_s27 = smov %s3448_s28 }
 0x367   : > { %s4559_s28 = smov %s4561_s9  ;;  %19 = sbr.rel (!%p17_p5) target bundleno = 4 (0x4), region = 88 }
 0x36e   :  { %2799 = vsyncpa [#allocation4], 1 }
 0x36f   :  { %2801 = vsyncpa [#allocation4 + $0x1], 1 }

</bundles_post_ra>
